<compile_context>
chip_gen: v7x
topology: tpu7x:2x2x1
jax: 0.10.0
libtpu: 0.0.40
codegen_flags: <defaults>
</compile_context>

<pallas_src>
import jax
import jax.numpy as jnp
from jax.experimental import pallas as pl
from jax.experimental.pallas import tpu as pltpu

HID = 64                 # channels per VoxCABHead branch
NBRANCH = 3
FEAT = HID * NBRANCH     # 192 channels after torch.cat(..., dim=1)
NCLS = 2                 # SegHead output classes
FCHUNK = 32              # FEAT chunk kept live between the two matmuls (<=128)
assert FEAT % FCHUNK == 0
NCHUNK = FEAT // FCHUNK  # 6


def _segffn_kernel(x_ref, w1_ref, b1_ref, ws_ref, bs_ref, o_ref):
    # x_ref : (C, tileS)              f32  voxels; channels on sublanes, spatial on lanes
    # w1    : (NCHUNK, FCHUNK, C)     f32  fused featureHead weight (transposed, chunked)
    # b1    : (NCHUNK, FCHUNK, 1)     f32
    # ws    : (NCHUNK, NCLS, FCHUNK)  bf16 SegHead weight (transposed, chunked)
    # bs    : (NCLS, 1)               f32
    # o_ref : (NCLS, tileS)           f32  lane-dense output tile
    x = x_ref[...]
    seg = jnp.broadcast_to(bs_ref[...], o_ref.shape).astype(jnp.float32)
    # Interleave matmul-1 (C->FEAT) and matmul-2 (FEAT->NCLS) over FEAT chunks
    # so the 192-wide intermediate never materializes at full width; each
    # chunk's activations feed the second MXU pass as bf16 (f32 accumulate).
    for c in range(NCHUNK):
        w1c = w1_ref[c]                      # (FCHUNK, C)   static index -> view
        b1c = b1_ref[c]                      # (FCHUNK, 1)
        hc = jnp.maximum(
            jnp.dot(w1c, x, preferred_element_type=jnp.float32) + b1c, 0.0)
        hc = hc.astype(jnp.bfloat16)
        wsc = ws_ref[c]                      # (NCLS, FCHUNK) bf16
        seg = seg + jnp.dot(wsc, hc, preferred_element_type=jnp.float32)
    o_ref[...] = seg.astype(o_ref.dtype)


def segffn_forward(x_ncdhw, params, *, tile_s=8192):
    """x_ncdhw: (N, Cin, D, H, W) float32. Returns (N, NCLS, D, H, W)."""
    N, C, D, H, W = x_ncdhw.shape
    S = D * H * W

    # Lane-dense spatial tile: multiple of 128 lanes, no larger than the volume.
    ts = min(tile_s, pl.cdiv(S, 128) * 128)
    ts = max(128, (ts // 128) * 128)
    # Megacore coverage for small batch: keep >= 2 spatial tiles when N == 1.
    if N == 1:
        while pl.cdiv(S, ts) < 2 and ts > 128:
            ts = max(128, ((ts // 2) // 128) * 128)
    n_s = pl.cdiv(S, ts)

    # Free reshape NCDHW -> (N, C, S). No pad and no output slice: a ragged last
    # spatial tile is handled by Mosaic edge masking (OOB loads are don't-care
    # columns, OOB stores are dropped), so no extra HBM passes over x / out.
    x_r = x_ncdhw.reshape(N, C, S)

    # Fuse the three featureHead branches into one weight/bias, transpose so
    # channels sit on sublanes, and pre-chunk along FEAT for the in-kernel
    # interleave.  SegHead weight is packed to bf16 (matmul-2 accumulates f32).
    w1t = jnp.concatenate([params["wa"], params["wb"], params["wc"]], axis=1).T  # (FEAT, C)
    b1t = jnp.concatenate([params["ba"], params["bb"], params["bc"]], axis=1).T  # (FEAT, 1)
    w1c = w1t.reshape(NCHUNK, FCHUNK, C)
    b1c = b1t.reshape(NCHUNK, FCHUNK, 1)
    wsc = params["ws"].T.reshape(NCLS, NCHUNK, FCHUNK).transpose(1, 0, 2)        # (NCHUNK, NCLS, FCHUNK)
    wsc = wsc.astype(jnp.bfloat16)
    bst = params["bs"].T                                                          # (NCLS, 1)

    def resident(shape):
        # tiny weight / bias blocks: whole array resident every grid step
        nd = len(shape)
        return pl.BlockSpec(shape, lambda s, n, _nd=nd: (0,) * _nd)

    flops = 2 * N * S * (FEAT * C + NCLS * FEAT)
    bytes_accessed = (4 * N * S * (C + NCLS)            # streamed input + output
                      + 4 * FEAT * (C + 1)              # fused W1 / b1
                      + 2 * NCLS * FEAT + 4 * NCLS)     # bf16 Ws + bs

    out = pl.pallas_call(
        _segffn_kernel,
        out_shape=jax.ShapeDtypeStruct((N, NCLS, S), jnp.float32),
        grid_spec=pltpu.PrefetchScalarGridSpec(
            num_scalar_prefetch=0,
            grid=(n_s, N),                                   # larger (spatial) axis first
            in_specs=[
                pl.BlockSpec((None, C, ts), lambda s, n: (n, 0, s)),   # voxel tile
                resident((NCHUNK, FCHUNK, C)),
                resident((NCHUNK, FCHUNK, 1)),
                resident((NCHUNK, NCLS, FCHUNK)),
                resident((NCLS, 1)),
            ],
            out_specs=pl.BlockSpec((None, NCLS, ts), lambda s, n: (n, 0, s)),
        ),
        compiler_params=pltpu.CompilerParams(
            dimension_semantics=("parallel", "parallel"),
            vmem_limit_bytes=32 * 1024 * 1024,
        ),
        cost_estimate=pl.CostEstimate(
            flops=flops, transcendentals=0, bytes_accessed=bytes_accessed),
    )(x_r, w1c, b1c, wsc, bst)

    return out.reshape(N, NCLS, D, H, W)


def ref_forward(x_ncdhw, params):
    """Pure-JAX reference of the same computation (channels-last, f32 HIGHEST)."""
    N, C, D, H, W = x_ncdhw.shape
    xf = jnp.transpose(x_ncdhw, (0, 2, 3, 4, 1)).reshape(-1, C)
    mm = lambda a, b: jnp.dot(a, b, precision="highest")
    fa = jax.nn.relu(mm(xf, params["wa"]) + params["ba"])
    fb = jax.nn.relu(mm(xf, params["wb"]) + params["bb"])
    fc = jax.nn.relu(mm(xf, params["wc"]) + params["bc"])
    rrb = jnp.concatenate([fa, fb, fc], axis=-1)          # torch.cat(..., dim=1)
    seg = mm(rrb, params["ws"]) + params["bs"]
    return jnp.transpose(seg.reshape(N, D, H, W, NCLS), (0, 4, 1, 2, 3))


def init_params(key, in_dims):
    ks = jax.random.split(key, 8)
    s = 0.1
    return {
        "wa": s * jax.random.normal(ks[0], (in_dims, HID), jnp.float32),
        "ba": s * jax.random.normal(ks[1], (1, HID), jnp.float32),
        "wb": s * jax.random.normal(ks[2], (in_dims, HID), jnp.float32),
        "bb": s * jax.random.normal(ks[3], (1, HID), jnp.float32),
        "wc": s * jax.random.normal(ks[4], (in_dims, HID), jnp.float32),
        "bc": s * jax.random.normal(ks[5], (1, HID), jnp.float32),
        "ws": s * jax.random.normal(ks[6], (FEAT, NCLS), jnp.float32),
        "bs": s * jax.random.normal(ks[7], (1, NCLS), jnp.float32),
    }


if __name__ == "__main__":
    key = jax.random.PRNGKey(0)
    k_x, k_p = jax.random.split(key)

    N, Cin, D, H, W = 2, 4, 8, 8, 8          # small NCDHW volume
    x = jax.random.normal(k_x, (N, Cin, D, H, W), jnp.float32)
    params = init_params(k_p, Cin)

    out = jax.block_until_ready(segffn_forward(x, params))
    ref = jax.block_until_ready(ref_forward(x, params))

    assert out.shape == (N, NCLS, D, H, W), out.shape
    # bf16 h / Ws in the kernel trades ~1e-3-level absolute error for MXU throughput.
    assert jnp.allclose(out, ref, rtol=1e-2, atol=1e-2), \
        float(jnp.max(jnp.abs(out - ref)))

    print("KERNEL_OK")
</pallas_src>

<mosaic_0001>
module attributes {stable_mosaic.version = 11 : i64} {
  func.func @_segffn_kernel(%arg0: i32, %arg1: i32, %arg2: memref<1x4x512xf32, #tpu.memory_space<vmem>>, %arg3: memref<6x32x4xf32, #tpu.memory_space<vmem>>, %arg4: memref<6x32x1xf32, #tpu.memory_space<vmem>>, %arg5: memref<6x2x32xbf16, #tpu.memory_space<vmem>>, %arg6: memref<2x1xf32, #tpu.memory_space<vmem>>, %arg7: memref<1x2x512xf32, #tpu.memory_space<vmem>>) attributes {dimension_semantics = [#tpu.dimension_semantics<parallel>, #tpu.dimension_semantics<parallel>], iteration_bounds = array<i64: 1, 2>, scalar_prefetch = 0 : i64, scratch_operands = 0 : i64, tpu.core_type = #tpu.core_type<tc>, window_params = [{transform_indices = @transform_0, window_bounds = array<i64: 1, 4, 512>}, {pipeline_mode = #tpu.pipeline_mode<synchronous>, transform_indices = @transform_1, window_bounds = array<i64: 6, 32, 4>}, {pipeline_mode = #tpu.pipeline_mode<synchronous>, transform_indices = @transform_2, window_bounds = array<i64: 6, 32, 1>}, {pipeline_mode = #tpu.pipeline_mode<synchronous>, transform_indices = @transform_3, window_bounds = array<i64: 6, 2, 32>}, {pipeline_mode = #tpu.pipeline_mode<synchronous>, transform_indices = @transform_4, window_bounds = array<i64: 2, 1>}, {transform_indices = @transform_5, window_bounds = array<i64: 1, 2, 512>}]} {
    %c0 = arith.constant 0 : index
    %c0_0 = arith.constant 0 : index
    %c0_1 = arith.constant 0 : index
    %0 = vector.load %arg2[%c0, %c0_0, %c0_1] : memref<1x4x512xf32, #tpu.memory_space<vmem>>, vector<1x4x512xf32>
    %1 = vector.shape_cast %0 : vector<1x4x512xf32> to vector<4x512xf32>
    %c0_2 = arith.constant 0 : index
    %c0_3 = arith.constant 0 : index
    %2 = vector.load %arg6[%c0_2, %c0_3] : memref<2x1xf32, #tpu.memory_space<vmem>>, vector<2x1xf32>
    %3 = vector.shape_cast %2 : vector<2x1xf32> to vector<2x1xf32>
    %4 = vector.broadcast %3 : vector<2x1xf32> to vector<2x512xf32>
    %c0_4 = arith.constant 0 : index
    %c0_5 = arith.constant 0 : index
    %c0_6 = arith.constant 0 : index
    %5 = vector.load %arg3[%c0_4, %c0_5, %c0_6] : memref<6x32x4xf32, #tpu.memory_space<vmem>>, vector<1x32x4xf32>
    %6 = vector.shape_cast %5 : vector<1x32x4xf32> to vector<32x4xf32>
    %c0_7 = arith.constant 0 : index
    %c0_8 = arith.constant 0 : index
    %c0_9 = arith.constant 0 : index
    %7 = vector.load %arg4[%c0_7, %c0_8, %c0_9] : memref<6x32x1xf32, #tpu.memory_space<vmem>>, vector<1x32x1xf32>
    %8 = vector.shape_cast %7 : vector<1x32x1xf32> to vector<32x1xf32>
    %cst = arith.constant dense<0.000000e+00> : vector<32x512xf32>
    %9 = tpu.matmul %6, %1, %cst {dimension_numbers = #tpu.dot_dimension_numbers<[1], [0], [0], [1], [0, 0, 1, 1], [], []>} : vector<32x4xf32>, vector<4x512xf32>, vector<32x512xf32> -> vector<32x512xf32>
    %10 = vector.broadcast %8 : vector<32x1xf32> to vector<32x512xf32>
    %11 = arith.addf %9, %10 : vector<32x512xf32>
    %cst_10 = arith.constant 0.000000e+00 : f32
    %12 = vector.broadcast %cst_10 : f32 to vector<32x512xf32>
    %13 = arith.maximumf %11, %12 : vector<32x512xf32>
    %14 = arith.truncf %13 : vector<32x512xf32> to vector<32x512xbf16>
    %c0_11 = arith.constant 0 : index
    %c0_12 = arith.constant 0 : index
    %c0_13 = arith.constant 0 : index
    %15 = vector.load %arg5[%c0_11, %c0_12, %c0_13] : memref<6x2x32xbf16, #tpu.memory_space<vmem>>, vector<1x2x32xbf16>
    %16 = vector.shape_cast %15 : vector<1x2x32xbf16> to vector<2x32xbf16>
    %cst_14 = arith.constant dense<0.000000e+00> : vector<2x512xf32>
    %17 = tpu.matmul %16, %14, %cst_14 {dimension_numbers = #tpu.dot_dimension_numbers<[1], [0], [0], [1], [0, 0, 1, 1], [], []>} : vector<2x32xbf16>, vector<32x512xbf16>, vector<2x512xf32> -> vector<2x512xf32>
    %18 = arith.addf %4, %17 : vector<2x512xf32>
    %c1 = arith.constant 1 : index
    %c0_15 = arith.constant 0 : index
    %c0_16 = arith.constant 0 : index
    %19 = vector.load %arg3[%c1, %c0_15, %c0_16] : memref<6x32x4xf32, #tpu.memory_space<vmem>>, vector<1x32x4xf32>
    %20 = vector.shape_cast %19 : vector<1x32x4xf32> to vector<32x4xf32>
    %c1_17 = arith.constant 1 : index
    %c0_18 = arith.constant 0 : index
    %c0_19 = arith.constant 0 : index
    %21 = vector.load %arg4[%c1_17, %c0_18, %c0_19] : memref<6x32x1xf32, #tpu.memory_space<vmem>>, vector<1x32x1xf32>
    %22 = vector.shape_cast %21 : vector<1x32x1xf32> to vector<32x1xf32>
    %cst_20 = arith.constant dense<0.000000e+00> : vector<32x512xf32>
    %23 = tpu.matmul %20, %1, %cst_20 {dimension_numbers = #tpu.dot_dimension_numbers<[1], [0], [0], [1], [0, 0, 1, 1], [], []>} : vector<32x4xf32>, vector<4x512xf32>, vector<32x512xf32> -> vector<32x512xf32>
    %24 = vector.broadcast %22 : vector<32x1xf32> to vector<32x512xf32>
    %25 = arith.addf %23, %24 : vector<32x512xf32>
    %cst_21 = arith.constant 0.000000e+00 : f32
    %26 = vector.broadcast %cst_21 : f32 to vector<32x512xf32>
    %27 = arith.maximumf %25, %26 : vector<32x512xf32>
    %28 = arith.truncf %27 : vector<32x512xf32> to vector<32x512xbf16>
    %c1_22 = arith.constant 1 : index
    %c0_23 = arith.constant 0 : index
    %c0_24 = arith.constant 0 : index
    %29 = vector.load %arg5[%c1_22, %c0_23, %c0_24] : memref<6x2x32xbf16, #tpu.memory_space<vmem>>, vector<1x2x32xbf16>
    %30 = vector.shape_cast %29 : vector<1x2x32xbf16> to vector<2x32xbf16>
    %cst_25 = arith.constant dense<0.000000e+00> : vector<2x512xf32>
    %31 = tpu.matmul %30, %28, %cst_25 {dimension_numbers = #tpu.dot_dimension_numbers<[1], [0], [0], [1], [0, 0, 1, 1], [], []>} : vector<2x32xbf16>, vector<32x512xbf16>, vector<2x512xf32> -> vector<2x512xf32>
    %32 = arith.addf %18, %31 : vector<2x512xf32>
    %c2 = arith.constant 2 : index
    %c0_26 = arith.constant 0 : index
    %c0_27 = arith.constant 0 : index
    %33 = vector.load %arg3[%c2, %c0_26, %c0_27] : memref<6x32x4xf32, #tpu.memory_space<vmem>>, vector<1x32x4xf32>
    %34 = vector.shape_cast %33 : vector<1x32x4xf32> to vector<32x4xf32>
    %c2_28 = arith.constant 2 : index
    %c0_29 = arith.constant 0 : index
    %c0_30 = arith.constant 0 : index
    %35 = vector.load %arg4[%c2_28, %c0_29, %c0_30] : memref<6x32x1xf32, #tpu.memory_space<vmem>>, vector<1x32x1xf32>
    %36 = vector.shape_cast %35 : vector<1x32x1xf32> to vector<32x1xf32>
    %cst_31 = arith.constant dense<0.000000e+00> : vector<32x512xf32>
    %37 = tpu.matmul %34, %1, %cst_31 {dimension_numbers = #tpu.dot_dimension_numbers<[1], [0], [0], [1], [0, 0, 1, 1], [], []>} : vector<32x4xf32>, vector<4x512xf32>, vector<32x512xf32> -> vector<32x512xf32>
    %38 = vector.broadcast %36 : vector<32x1xf32> to vector<32x512xf32>
    %39 = arith.addf %37, %38 : vector<32x512xf32>
    %cst_32 = arith.constant 0.000000e+00 : f32
    %40 = vector.broadcast %cst_32 : f32 to vector<32x512xf32>
    %41 = arith.maximumf %39, %40 : vector<32x512xf32>
    %42 = arith.truncf %41 : vector<32x512xf32> to vector<32x512xbf16>
    %c2_33 = arith.constant 2 : index
    %c0_34 = arith.constant 0 : index
    %c0_35 = arith.constant 0 : index
    %43 = vector.load %arg5[%c2_33, %c0_34, %c0_35] : memref<6x2x32xbf16, #tpu.memory_space<vmem>>, vector<1x2x32xbf16>
    %44 = vector.shape_cast %43 : vector<1x2x32xbf16> to vector<2x32xbf16>
    %cst_36 = arith.constant dense<0.000000e+00> : vector<2x512xf32>
    %45 = tpu.matmul %44, %42, %cst_36 {dimension_numbers = #tpu.dot_dimension_numbers<[1], [0], [0], [1], [0, 0, 1, 1], [], []>} : vector<2x32xbf16>, vector<32x512xbf16>, vector<2x512xf32> -> vector<2x512xf32>
    %46 = arith.addf %32, %45 : vector<2x512xf32>
    %c3 = arith.constant 3 : index
    %c0_37 = arith.constant 0 : index
    %c0_38 = arith.constant 0 : index
    %47 = vector.load %arg3[%c3, %c0_37, %c0_38] : memref<6x32x4xf32, #tpu.memory_space<vmem>>, vector<1x32x4xf32>
    %48 = vector.shape_cast %47 : vector<1x32x4xf32> to vector<32x4xf32>
    %c3_39 = arith.constant 3 : index
    %c0_40 = arith.constant 0 : index
    %c0_41 = arith.constant 0 : index
    %49 = vector.load %arg4[%c3_39, %c0_40, %c0_41] : memref<6x32x1xf32, #tpu.memory_space<vmem>>, vector<1x32x1xf32>
    %50 = vector.shape_cast %49 : vector<1x32x1xf32> to vector<32x1xf32>
    %cst_42 = arith.constant dense<0.000000e+00> : vector<32x512xf32>
    %51 = tpu.matmul %48, %1, %cst_42 {dimension_numbers = #tpu.dot_dimension_numbers<[1], [0], [0], [1], [0, 0, 1, 1], [], []>} : vector<32x4xf32>, vector<4x512xf32>, vector<32x512xf32> -> vector<32x512xf32>
    %52 = vector.broadcast %50 : vector<32x1xf32> to vector<32x512xf32>
    %53 = arith.addf %51, %52 : vector<32x512xf32>
    %cst_43 = arith.constant 0.000000e+00 : f32
    %54 = vector.broadcast %cst_43 : f32 to vector<32x512xf32>
    %55 = arith.maximumf %53, %54 : vector<32x512xf32>
    %56 = arith.truncf %55 : vector<32x512xf32> to vector<32x512xbf16>
    %c3_44 = arith.constant 3 : index
    %c0_45 = arith.constant 0 : index
    %c0_46 = arith.constant 0 : index
    %57 = vector.load %arg5[%c3_44, %c0_45, %c0_46] : memref<6x2x32xbf16, #tpu.memory_space<vmem>>, vector<1x2x32xbf16>
    %58 = vector.shape_cast %57 : vector<1x2x32xbf16> to vector<2x32xbf16>
    %cst_47 = arith.constant dense<0.000000e+00> : vector<2x512xf32>
    %59 = tpu.matmul %58, %56, %cst_47 {dimension_numbers = #tpu.dot_dimension_numbers<[1], [0], [0], [1], [0, 0, 1, 1], [], []>} : vector<2x32xbf16>, vector<32x512xbf16>, vector<2x512xf32> -> vector<2x512xf32>
    %60 = arith.addf %46, %59 : vector<2x512xf32>
    %c4 = arith.constant 4 : index
    %c0_48 = arith.constant 0 : index
    %c0_49 = arith.constant 0 : index
    %61 = vector.load %arg3[%c4, %c0_48, %c0_49] : memref<6x32x4xf32, #tpu.memory_space<vmem>>, vector<1x32x4xf32>
    %62 = vector.shape_cast %61 : vector<1x32x4xf32> to vector<32x4xf32>
    %c4_50 = arith.constant 4 : index
    %c0_51 = arith.constant 0 : index
    %c0_52 = arith.constant 0 : index
    %63 = vector.load %arg4[%c4_50, %c0_51, %c0_52] : memref<6x32x1xf32, #tpu.memory_space<vmem>>, vector<1x32x1xf32>
    %64 = vector.shape_cast %63 : vector<1x32x1xf32> to vector<32x1xf32>
    %cst_53 = arith.constant dense<0.000000e+00> : vector<32x512xf32>
    %65 = tpu.matmul %62, %1, %cst_53 {dimension_numbers = #tpu.dot_dimension_numbers<[1], [0], [0], [1], [0, 0, 1, 1], [], []>} : vector<32x4xf32>, vector<4x512xf32>, vector<32x512xf32> -> vector<32x512xf32>
    %66 = vector.broadcast %64 : vector<32x1xf32> to vector<32x512xf32>
    %67 = arith.addf %65, %66 : vector<32x512xf32>
    %cst_54 = arith.constant 0.000000e+00 : f32
    %68 = vector.broadcast %cst_54 : f32 to vector<32x512xf32>
    %69 = arith.maximumf %67, %68 : vector<32x512xf32>
    %70 = arith.truncf %69 : vector<32x512xf32> to vector<32x512xbf16>
    %c4_55 = arith.constant 4 : index
    %c0_56 = arith.constant 0 : index
    %c0_57 = arith.constant 0 : index
    %71 = vector.load %arg5[%c4_55, %c0_56, %c0_57] : memref<6x2x32xbf16, #tpu.memory_space<vmem>>, vector<1x2x32xbf16>
    %72 = vector.shape_cast %71 : vector<1x2x32xbf16> to vector<2x32xbf16>
    %cst_58 = arith.constant dense<0.000000e+00> : vector<2x512xf32>
    %73 = tpu.matmul %72, %70, %cst_58 {dimension_numbers = #tpu.dot_dimension_numbers<[1], [0], [0], [1], [0, 0, 1, 1], [], []>} : vector<2x32xbf16>, vector<32x512xbf16>, vector<2x512xf32> -> vector<2x512xf32>
    %74 = arith.addf %60, %73 : vector<2x512xf32>
    %c5 = arith.constant 5 : index
    %c0_59 = arith.constant 0 : index
    %c0_60 = arith.constant 0 : index
    %75 = vector.load %arg3[%c5, %c0_59, %c0_60] : memref<6x32x4xf32, #tpu.memory_space<vmem>>, vector<1x32x4xf32>
    %76 = vector.shape_cast %75 : vector<1x32x4xf32> to vector<32x4xf32>
    %c5_61 = arith.constant 5 : index
    %c0_62 = arith.constant 0 : index
    %c0_63 = arith.constant 0 : index
    %77 = vector.load %arg4[%c5_61, %c0_62, %c0_63] : memref<6x32x1xf32, #tpu.memory_space<vmem>>, vector<1x32x1xf32>
    %78 = vector.shape_cast %77 : vector<1x32x1xf32> to vector<32x1xf32>
    %cst_64 = arith.constant dense<0.000000e+00> : vector<32x512xf32>
    %79 = tpu.matmul %76, %1, %cst_64 {dimension_numbers = #tpu.dot_dimension_numbers<[1], [0], [0], [1], [0, 0, 1, 1], [], []>} : vector<32x4xf32>, vector<4x512xf32>, vector<32x512xf32> -> vector<32x512xf32>
    %80 = vector.broadcast %78 : vector<32x1xf32> to vector<32x512xf32>
    %81 = arith.addf %79, %80 : vector<32x512xf32>
    %cst_65 = arith.constant 0.000000e+00 : f32
    %82 = vector.broadcast %cst_65 : f32 to vector<32x512xf32>
    %83 = arith.maximumf %81, %82 : vector<32x512xf32>
    %84 = arith.truncf %83 : vector<32x512xf32> to vector<32x512xbf16>
    %c5_66 = arith.constant 5 : index
    %c0_67 = arith.constant 0 : index
    %c0_68 = arith.constant 0 : index
    %85 = vector.load %arg5[%c5_66, %c0_67, %c0_68] : memref<6x2x32xbf16, #tpu.memory_space<vmem>>, vector<1x2x32xbf16>
    %86 = vector.shape_cast %85 : vector<1x2x32xbf16> to vector<2x32xbf16>
    %cst_69 = arith.constant dense<0.000000e+00> : vector<2x512xf32>
    %87 = tpu.matmul %86, %84, %cst_69 {dimension_numbers = #tpu.dot_dimension_numbers<[1], [0], [0], [1], [0, 0, 1, 1], [], []>} : vector<2x32xbf16>, vector<32x512xbf16>, vector<2x512xf32> -> vector<2x512xf32>
    %88 = arith.addf %74, %87 : vector<2x512xf32>
    %c0_70 = arith.constant 0 : index
    %c0_71 = arith.constant 0 : index
    %c0_72 = arith.constant 0 : index
    %89 = vector.load %arg7[%c0_70, %c0_71, %c0_72] : memref<1x2x512xf32, #tpu.memory_space<vmem>>, vector<1x2x512xf32>
    %90 = vector.shape_cast %89 : vector<1x2x512xf32> to vector<2x512xf32>
    %91 = vector.shape_cast %88 : vector<2x512xf32> to vector<1x2x512xf32>
    tpu.vector_store %arg7[%c0_70, %c0_71, %c0_72], %91 {strides = array<i32>} : memref<1x2x512xf32, #tpu.memory_space<vmem>>, vector<1x2x512xf32>,
    return
  }
  func.func @transform_0(%arg0: i32, %arg1: i32) -> (i32, i32, i32) {
    %c0_i32 = arith.constant 0 : i32
    %c0_i32_0 = arith.constant 0 : i32
    return %arg1, %c0_i32, %arg0 : i32, i32, i32
  }
  func.func @transform_1(%arg0: i32, %arg1: i32) -> (i32, i32, i32) {
    %c0_i32 = arith.constant 0 : i32
    %c0_i32_0 = arith.constant 0 : i32
    %c0_i32_1 = arith.constant 0 : i32
    %c0_i32_2 = arith.constant 0 : i32
    return %c0_i32, %c0_i32_0, %c0_i32_1 : i32, i32, i32
  }
  func.func @transform_2(%arg0: i32, %arg1: i32) -> (i32, i32, i32) {
    %c0_i32 = arith.constant 0 : i32
    %c0_i32_0 = arith.constant 0 : i32
    %c0_i32_1 = arith.constant 0 : i32
    %c0_i32_2 = arith.constant 0 : i32
    return %c0_i32, %c0_i32_0, %c0_i32_1 : i32, i32, i32
  }
  func.func @transform_3(%arg0: i32, %arg1: i32) -> (i32, i32, i32) {
    %c0_i32 = arith.constant 0 : i32
    %c0_i32_0 = arith.constant 0 : i32
    %c0_i32_1 = arith.constant 0 : i32
    %c0_i32_2 = arith.constant 0 : i32
    return %c0_i32, %c0_i32_0, %c0_i32_1 : i32, i32, i32
  }
  func.func @transform_4(%arg0: i32, %arg1: i32) -> (i32, i32) {
    %c0_i32 = arith.constant 0 : i32
    %c0_i32_0 = arith.constant 0 : i32
    %c0_i32_1 = arith.constant 0 : i32
    return %c0_i32, %c0_i32_0 : i32, i32
  }
  func.func @transform_5(%arg0: i32, %arg1: i32) -> (i32, i32, i32) {
    %c0_i32 = arith.constant 0 : i32
    %c0_i32_0 = arith.constant 0 : i32
    return %arg1, %c0_i32, %arg0 : i32, i32, i32
  }
}

</mosaic_0001>

<bundles_post_ra>
// kernel: tpu_custom_call.1
= control target key start
LH: loop header
LB: loop body
LE: loop exit
PB: predicated region body
PF: predicated region fallthrough
CT: control target
= control target key end

     0   :  { %10 = vsyncpa [#allocation3], 0  ;;  %s3230_s0 = inlined_call_operand.vmem [shape: f32[2,4,512], index: 0, kind: input, shape index: {}]   ;;  %s3231_s1 = inlined_call_operand.vmem [shape: f32[6,32,4], index: 1, kind: input, shape index: {}]   ;;  %s3232_s2 = inlined_call_operand.vmem [shape: f32[6,32,1], index: 2, kind: input, shape index: {}]   ;;  %s3233_s3 = inlined_call_operand.vmem [shape: bf16[6,2,32], index: 3, kind: input, shape index: {}]   ;;  %s3234_s4 = inlined_call_operand.vmem [shape: f32[2,1], index: 4, kind: input, shape index: {}]   ;;  %s3235_s5 = inlined_call_operand.hbm [shape: f32[2,2,512], index: 5, kind: output, shape index: {}]  }
   0x1   :  { %12 = vsyncpa [#allocation3 + $0x1], 0  ;;  %s2767_s18 = smov 0   ;;  %s2769_s19 = smov 0  }
   0x2   :  { %s2771_s20 = smov 0   ;;  %s2773_s21 = smov 0  }
   0x3   :  { %s2775_s22 = smov 0   ;;  %s2777_s23 = smov 0  }
   0x4 LB: > { %s2401_s24 = sadd.s32 4294967295, %s2731_s23   ;;  %s2402_s25 = sadd.s32 4294967294, %s2731_s23   ;;  %s2731_s23 = sphi %s2777_s23, %s18_s23   ;;  %s2727_s22 = sphi %s2775_s22, %s3242_s22   ;;  %s2723_s21 = sphi %s2773_s21, %s3241_s21   ;;  %s2719_s20 = sphi %s2771_s20, %s3240_s20   ;;  %s2715_s19 = sphi %s2769_s19, %s3239_s19   ;;  %s2711_s18 = sphi %s2767_s18, %s3238_s18  }
   0x5   : > { %s27_s26 = sadd.s32 1, %s2727_s22  ;;  %s151_s27 = sadd.s32 1, %s2719_s20 }
   0x6   : > { %p28_p0 = scmp.ge.s32.totalorder %s27_s26, 2  ;;  %p161_p1 = scmp.ne.s32.totalorder %s2719_s20, %s2715_s19 }
   0x7   : > { %p162_p2 = scmp.eq.s32.totalorder %s2401_s24, 1  ;;  %p167_p3 = scmp.ne.s32.totalorder %s2715_s19, %s2711_s18 }
   0x8   : > { %s3244_s26 = smov (%p28_p0, %s27_s26), 0  ;;  %p168_p5 = scmp.eq.s32.totalorder %s2402_s25, 1 }
   0x9   : > { %p2807_p4 = por %p162_p2, %p161_p1  ;;  %s146_s29 = ssub.s32 %s2727_s22, %s3244_s26 }
   0xa   : > { %p2405_p6 = scmp.ge.s32.totalorder %s2731_s23, 1  ;;  %p149_p7 = scmp.eq.s32.totalorder %s146_s29, 0 }
   0xb   : > { %p2814_p8 = por %p168_p5, %p167_p3  ;;  %p211_p9 = scmp.lt.s32.totalorder %s2731_s23, 3 }
   0xc   : > { %s2820_s6 = scalar_select %p149_p7, %s2719_s20, %s151_s27  }
   0xd   : > { %p212_p10 = pnand %p2405_p6, %p211_p9 }
   0xe   : > { %p244_p11 = scmp.lt.s32.totalorder (!%p212_p10), %s2723_s21, 1  ;;  %v2733_v0 = vmov (!%p212_p10), 0.0   ;;  %v267_v1 = vld [vmem:[%s3232_s2] sm:$0xff] (!%p212_p10)  ;;  %v2734_v2 = vmov (!%p212_p10), 0   ;;  %v269_v3 = vld [vmem:[%s3232_s2 + $0x10] sm:$0xff] (!%p212_p10)  ;;  %v268_v4 = vld [vmem:[%s3232_s2 + $0x8] sm:$0xff] (!%p212_p10) }
   0xf   : > { %215 = sbr.rel (%p212_p10) target bundleno = 1716 (0x6b4), region = 40  ;;  %381 = vmatprep.mubr.f32.mxu0 (!%p212_p10), %v2733_v0  ;;  %470 = vmatprep.mubr.f32.mxu1 (!%p212_p10), %v2733_v0  ;;  %v270_v5 = vld [vmem:[%s3232_s2 + $0x18] sm:$0xff] (!%p212_p10)  ;;  %vm308_vm0 = vcmask (!%p212_p10), 1043456   ;;  %v263_v10 = vld [vmem:[%s3231_s1] sm:$0xff] (!%p212_p10)  ;;  %vm295_vm1 = vcmask (!%p212_p10), 31744   ;;  %v2428_v12 = vld [vmem:[%s3232_s2 + $0x28] sm:$0xff] (!%p212_p10) }
  0x10   : > { %2647 = vset.pattern.permute.xlu0 (!%p212_p10), %v2734_v2  ;;  %2648 = vset.pattern.permute.xlu1 (!%p212_p10), %v2734_v2  ;;  %v2427_v11 = vld [vmem:[%s3232_s2 + $0x20] sm:$0xff] (!%p212_p10)  ;;  %v264_v13 = vld [vmem:[%s3231_s1 + $0x8] sm:$0xff] (!%p212_p10)  ;;  %v2429_v14 = vld [vmem:[%s3232_s2 + $0x30] sm:$0xff] (!%p212_p10)  ;;  %vm520_vm2 = vcmask (!%p212_p10), 261120   ;;  %s240_s8 = sand.u32 (!%p212_p10), 1, %s2715_s19   ;;  %s2544_s10 = sshll.u32 (!%p212_p10), %s2723_s21, 7 }
  0x11   : > { %273 = vperm.xlu0 (!%p212_p10), %2647, %v267_v1   ;;  %283 = vperm.xlu1 (!%p212_p10), %2648, %v269_v3   ;;  %v2430_v15 = vld [vmem:[%s3232_s2 + $0x38] sm:$0xff] (!%p212_p10)  ;;  %v265_v16 = vld [vmem:[%s3231_s1 + $0x10] sm:$0xff] (!%p212_p10)  ;;  %v2450_v17 = vld [vmem:[%s3232_s2 + $0x40] sm:$0xff] (!%p212_p10)  ;;  %s3183_s15 = scalar_lea.hbm (!%p212_p10), %s3235_s5, %s2544_s10 }
  0x12   : > { %v2451_v18 = vld [vmem:[%s3232_s2 + $0x48] sm:$0xff] (!%p212_p10)  ;;  %v266_v19 = vld [vmem:[%s3231_s1 + $0x18] sm:$0xff] (!%p212_p10)  ;;  %v2452_v20 = vld [vmem:[%s3232_s2 + $0x50] sm:$0xff] (!%p212_p10) }
  0x13   : > { %v2453_v21 = vld [vmem:[%s3232_s2 + $0x58] sm:$0xff] (!%p212_p10)  ;;  %v2473_v22 = vld [vmem:[%s3232_s2 + $0x60] sm:$0xff] (!%p212_p10)  ;;  %v2474_v23 = vld [vmem:[%s3232_s2 + $0x68] sm:$0xff] (!%p212_p10) }
  0x14   : > { %v2475_v24 = vld [vmem:[%s3232_s2 + $0x70] sm:$0xff] (!%p212_p10)  ;;  %v2476_v25 = vld [vmem:[%s3232_s2 + $0x78] sm:$0xff] (!%p212_p10)  ;;  %v2496_v26 = vld [vmem:[%s3232_s2 + $0x80] sm:$0xff] (!%p212_p10) }
  0x15   : > { %278 = vperm.xlu0 (!%p212_p10), %2647, %v268_v4   ;;  %288 = vperm.xlu1 (!%p212_p10), %2648, %v270_v5   ;;  %v2497_v27 = vld [vmem:[%s3232_s2 + $0x88] sm:$0xff] (!%p212_p10)  ;;  %v2498_v28 = vld [vmem:[%s3232_s2 + $0x90] sm:$0xff] (!%p212_p10)  ;;  %v2499_v29 = vld [vmem:[%s3232_s2 + $0x98] sm:$0xff] (!%p212_p10) }
  0x16   : > { %s245_s9 = scalar_select %p244_p11, %s2723_s21, 1  ;;  %v2519_v30 = vld [vmem:[%s3232_s2 + $0xa0] sm:$0xff]  ;;  %v2520_v31 = vld [vmem:[%s3232_s2 + $0xa8] sm:$0xff]  ;;  %v2521_v32 = vld [vmem:[%s3232_s2 + $0xb0] sm:$0xff] }
  0x17   : > { %v2522_v33 = vld [vmem:[%s3232_s2 + $0xb8] sm:$0xff]  ;;  %v257_v34 = vld [vmem:[%s3234_s4] sm:$0x3]  ;;  %s2736_s21 = smov [#allocation2]  }
  0x18   : > { %s2543_s12 = sshll.u32 %s245_s9, 4  ;;  %s2406_s9 = sshll.u32 %s240_s8, 3 }
  0x19   : > { %s2843_s25 = scalar_lea.vmem %s3230_s0, %s2543_s12  ;;  %622 = vperm.xlu0 %2647, %v2427_v11   ;;  %627 = vperm.xlu1 %2648, %v2428_v12   ;;  %s242_s11 = scalar_lea.vmem [#allocation2], %s2406_s9 }
  0x1a   : > { %v2846_v6 = vld [vmem:[%s2843_s25] sm:$0xff]  ;;  %v2849_v7 = vld [vmem:[%s2843_s25 + $0x8] sm:$0xff]  ;;  %s2325_s12 = sshll.u32 %s242_s11, 4  ;;  %s2657_s17 = sshll.u32 %s2736_s21, 4  ;;  %s3185_s12 = int_to_ptr.vmem [resolvable:$true] %s2325_s12  ;;  %s2658_s17 = int_to_ptr.vmem [resolvable:$false] %s2657_s17 }
  0x1b   : > { %v2853_v8 = vcombine.high %v2846_v6, %v2846_v6  ;;  %v2857_v9 = vcombine.high %v2849_v7, %v2849_v7  ;;  %s2653_s16 = scalar_lea.vmem %s3185_s12, 128  ;;  %s2659_s24 = scalar_lea.vmem %s2658_s17, 256 }
  0x1c   : > { %p2654_p12 = scmp.ne.s32.totalorder %s3185_s12, %s2653_s16  ;;  %p2660_p1 = scmp.lt.s32.totalorder %s3185_s12, %s2658_s17 }
  0x1d   : > { %2409 = vmatprep.subr.msk.mxu0 %vm308_vm0, %v2853_v8  ;;  %2415 = vmatprep.subr.msk.mxu1 %vm308_vm0, %v2857_v9  ;;  %p2661_p2 = scmp.lt.s32.totalorder %s2659_s24, %s2653_s16 }
  0x1e   : > { %2410 = vmatpush1.msk.msra.mxu0 %vm308_vm0, %v2846_v6  ;;  %2416 = vmatpush1.msk.msra.mxu1 %vm308_vm0, %v2849_v7  ;;  %p2655_p13 = pnand %p2654_p12, %p2807_p4 }
  0x1f   : > { %2411 = vmatmul.mubr.msk.f32.vlgmr.msra.gmra.mrb[0].mxu0 %vm295_vm1, %v263_v10  ;;  %2417 = vmatmul.mubr.msk.f32.vlgmr.msra.gmra.mrb[0].mxu1 %vm295_vm1, %v263_v10  ;;  %p2662_p3 = por %p2661_p2, %p2660_p1 }
  0x20   : > { %387 = vmatprep.mubr.f32.mxu0 %v2733_v0  ;;  %476 = vmatprep.mubr.f32.mxu1 %v2733_v0  ;;  %p2656_p0 = pneg %p2655_p13 }
  0x21   : > { %632 = vperm.xlu0 %2647, %v2429_v14   ;;  %637 = vperm.xlu1 %2648, %v2430_v15  }
  0x22   : > { %p2663_p5 = pnand %p2662_p3, %p2656_p0 }
  0x23   : > { %2412 = vmatmul.mubr.msk.f32.gmra.mrb[2].mxu0 %vm295_vm1, %v264_v13  ;;  %2418 = vmatmul.mubr.msk.f32.gmra.mrb[2].mxu1 %vm295_vm1, %v264_v13 }
  0x24   : > { %393 = vmatprep.mubr.f32.mxu0 %v2733_v0  ;;  %482 = vmatprep.mubr.f32.mxu1 %v2733_v0 }
  0x25   : > { %957 = vperm.xlu0 %2647, %v2450_v17   ;;  %962 = vperm.xlu1 %2648, %v2451_v18  }
  0x27   : > { %2413 = vmatmul.mubr.msk.f32.gmra.mrb[4].mxu0 %vm295_vm1, %v265_v16  ;;  %2419 = vmatmul.mubr.msk.f32.gmra.mrb[4].mxu1 %vm295_vm1, %v265_v16 }
  0x28   : > { %399 = vmatprep.mubr.f32.mxu0 %v2733_v0  ;;  %488 = vmatprep.mubr.f32.mxu1 %v2733_v0 }
  0x29   : > { %967 = vperm.xlu0 %2647, %v2452_v20   ;;  %972 = vperm.xlu1 %2648, %v2453_v21  }
  0x2b   : > { %2414 = vmatmul.mubr.msk.f32.gmra.mrb[6].mxu0 %vm295_vm1, %v266_v19  ;;  %2420 = vmatmul.mubr.msk.f32.gmra.mrb[6].mxu1 %vm295_vm1, %v266_v19 }
  0x2c   : > { %556 = vmatprep.mubr.bf16.mxu0 %v2734_v2  ;;  %597 = vmatprep.mubr.bf16.mxu1 %v2734_v2 }
  0x2d   : > { %1292 = vperm.xlu0 %2647, %v2473_v22   ;;  %1297 = vperm.xlu1 %2648, %v2474_v23  }
  0x31   : > { %1302 = vperm.xlu0 %2647, %v2475_v24   ;;  %1307 = vperm.xlu1 %2648, %v2476_v25  }
  0x35   : > { %1627 = vperm.xlu0 %2647, %v2496_v26   ;;  %1632 = vperm.xlu1 %2648, %v2497_v27  }
  0x39   : > { %1637 = vperm.xlu0 %2647, %v2498_v28   ;;  %1642 = vperm.xlu1 %2648, %v2499_v29  }
  0x3d   : > { %1962 = vperm.xlu0 %2647, %v2519_v30   ;;  %1967 = vperm.xlu1 %2648, %v2520_v31  }
  0x41   : > { %1972 = vperm.xlu0 %2647, %v2521_v32   ;;  %1977 = vperm.xlu1 %2648, %v2522_v33  }
  0x45   : > { %260 = vperm.xlu0 %2647, %v257_v34  }
  0x90   : > { %v274_v35 = vpop.permute.xlu0 %273  ;;  %v284_v41 = vpop.permute.xlu1 %283 }
  0x94   : > { %v279_v40 = vpop.permute.xlu0 %278  ;;  %v289_v12 = vpop.permute.xlu1 %288 }
  0xf2   : > { %v383_v36 = vpop.f32.mrb[0].mxu0  ;;  %v472_v37 = vpop.f32.mrb[0].mxu1 }
  0xf3   : > { %v385_v38 = vpop.f32.mrb[1].mxu0  ;;  %v474_v39 = vpop.f32.mrb[1].mxu1  ;;  %v384_v42 = vadd.f32 %v383_v36, %v274_v35  ;;  %v473_v43 = vadd.f32 %v472_v37, %v274_v35  ;;  %v519_v37 = vld [vmem:[%s3233_s3] sm:$0x1] }
  0xf4   : > { %v386_v44 = vadd.f32 %v385_v38, %v274_v35  ;;  %v475_v45 = vadd.f32 %v474_v39, %v274_v35  ;;  %v2423_v38 = vld [vmem:[%s3231_s1 + $0x20] sm:$0xff]  ;;  %v2424_v39 = vld [vmem:[%s3231_s1 + $0x28] sm:$0xff] }
  0xf5   : > { %v495_v54 = vmax.f32 %v384_v42, 0.0  ;;  %v497_v55 = vmax.f32 %v473_v43, 0.0 }
  0xf6   : > { %v389_v46 = vpop.f32.mrb[2].mxu0  ;;  %v478_v47 = vpop.f32.mrb[2].mxu1  ;;  %v496_v58 = vmax.f32 %v386_v44, 0.0  ;;  %v498_v59 = vmax.f32 %v475_v45, 0.0 }
  0xf7   : > { %v390_v48 = vadd.f32 %v389_v46, %v279_v40  ;;  %v479_v49 = vadd.f32 %v478_v47, %v279_v40  ;;  %v391_v50 = vpop.f32.mrb[3].mxu0  ;;  %v480_v51 = vpop.f32.mrb[3].mxu1 }
  0xf8   : > { %v392_v52 = vadd.f32 %v391_v50, %v279_v40  ;;  %v481_v53 = vadd.f32 %v480_v51, %v279_v40  ;;  %v2425_v40 = vld [vmem:[%s3231_s1 + $0x30] sm:$0xff]  ;;  %v623_v46 = vpop.permute.xlu0 %622  ;;  %v628_v47 = vpop.permute.xlu1 %627 }
  0xf9   : > { %v499_v56 = vmax.f32 %v390_v48, 0.0  ;;  %v501_v57 = vmax.f32 %v479_v49, 0.0 }
  0xfa   : > { %v500_v60 = vmax.f32 %v392_v52, 0.0  ;;  %v502_v61 = vmax.f32 %v481_v53, 0.0  ;;  %v395_v62 = vpop.f32.mrb[4].mxu0  ;;  %v484_v63 = vpop.f32.mrb[4].mxu1 }
  0xfb   : > { %v511_v1 = vpack.c.bf16 %v499_v56, %v495_v54  ;;  %v513_v3 = vpack.c.bf16 %v501_v57, %v497_v55  ;;  %v397_v4 = vpop.f32.mrb[5].mxu0  ;;  %v486_v5 = vpop.f32.mrb[5].mxu1  ;;  %v396_v13 = vadd.f32 %v395_v62, %v284_v41  ;;  %v485_v14 = vadd.f32 %v484_v63, %v284_v41 }
  0xfc   : > { %v512_v10 = vpack.c.bf16 %v500_v60, %v496_v58  ;;  %v514_v11 = vpack.c.bf16 %v502_v61, %v498_v59  ;;  %v398_v15 = vadd.f32 %v397_v4, %v284_v41  ;;  %v487_v16 = vadd.f32 %v486_v5, %v284_v41  ;;  %v2426_v41 = vld [vmem:[%s3231_s1 + $0x38] sm:$0xff] }
  0xfd   : > { %v503_v25 = vmax.f32 %v396_v13, 0.0  ;;  %v505_v26 = vmax.f32 %v485_v14, 0.0 }
  0xfe   : > { %v401_v17 = vpop.f32.mrb[6].mxu0  ;;  %v490_v18 = vpop.f32.mrb[6].mxu1  ;;  %524 = vmatprep.subr.bf16.mxu0 %v512_v10  ;;  %565 = vmatprep.subr.bf16.mxu1 %v514_v11  ;;  %v504_v29 = vmax.f32 %v398_v15, 0.0  ;;  %v506_v30 = vmax.f32 %v487_v16, 0.0 }
  0xff   : > { %v402_v19 = vadd.f32 %v401_v17, %v289_v12  ;;  %v491_v20 = vadd.f32 %v490_v18, %v289_v12  ;;  %v403_v21 = vpop.f32.mrb[7].mxu0  ;;  %v492_v22 = vpop.f32.mrb[7].mxu1  ;;  %525 = vmatpush1.bf16.msra.mxu0 %v511_v1  ;;  %566 = vmatpush1.bf16.msra.mxu1 %v513_v3 }
 0x100   : > { %v404_v23 = vadd.f32 %v403_v21, %v289_v12  ;;  %v493_v24 = vadd.f32 %v492_v22, %v289_v12  ;;  %v633_v16 = vpop.permute.xlu0 %632 }
 0x101   : > { %v507_v27 = vmax.f32 %v402_v19, 0.0  ;;  %v509_v28 = vmax.f32 %v491_v20, 0.0  ;;  %v638_v19 = vpop.permute.xlu1 %637 }
 0x102   : > { %v508_v31 = vmax.f32 %v404_v23, 0.0  ;;  %v510_v32 = vmax.f32 %v493_v24, 0.0 }
 0x103   : > { %v515_v33 = vpack.c.bf16 %v507_v27, %v503_v25  ;;  %v517_v34 = vpack.c.bf16 %v509_v28, %v505_v26 }
 0x104   : > { %v516_v35 = vpack.c.bf16 %v508_v31, %v504_v29  ;;  %v518_v36 = vpack.c.bf16 %v510_v32, %v506_v30 }
 0x106   : > { %526 = vmatprep.subr.bf16.mxu0 %v516_v35  ;;  %567 = vmatprep.subr.bf16.mxu1 %v518_v36 }
 0x107   : > { %527 = vmatpush1.bf16.msra.mxu0 %v515_v33  ;;  %568 = vmatpush1.bf16.msra.mxu1 %v517_v34 }
 0x108   : > { %2431 = vmatprep.subr.msk.mxu0 %vm308_vm0, %v2853_v8  ;;  %2437 = vmatprep.subr.msk.mxu1 %vm308_vm0, %v2857_v9 }
 0x10a   : > { %2421 = vmatmul.mubr.msk.bf16.vlgmr.msra.gmra.mrb[8].mxu0 %vm520_vm2, %v519_v37  ;;  %2422 = vmatmul.mubr.msk.bf16.vlgmr.msra.gmra.mrb[8].mxu1 %vm520_vm2, %v519_v37 }
 0x10b   : > { %2432 = vmatpush1.msk.msra.mxu0 %vm308_vm0, %v2846_v6  ;;  %2438 = vmatpush1.msk.msra.mxu1 %vm308_vm0, %v2849_v7 }
 0x10c   : > { %716 = vmatprep.mubr.f32.mxu0 %v2733_v0  ;;  %805 = vmatprep.mubr.f32.mxu1 %v2733_v0 }
 0x112   : > { %2433 = vmatmul.mubr.msk.f32.vlgmr.msra.gmra.mrb[12].mxu0 %vm295_vm1, %v2423_v38  ;;  %2439 = vmatmul.mubr.msk.f32.vlgmr.msra.gmra.mrb[12].mxu1 %vm295_vm1, %v2423_v38 }
 0x113   : > { %722 = vmatprep.mubr.f32.mxu0 %v2733_v0  ;;  %811 = vmatprep.mubr.f32.mxu1 %v2733_v0 }
 0x116   : > { %2434 = vmatmul.mubr.msk.f32.gmra.mrb[14].mxu0 %vm295_vm1, %v2424_v39  ;;  %2440 = vmatmul.mubr.msk.f32.gmra.mrb[14].mxu1 %vm295_vm1, %v2424_v39 }
 0x117   : > { %728 = vmatprep.mubr.f32.mxu0 %v2733_v0  ;;  %817 = vmatprep.mubr.f32.mxu1 %v2733_v0 }
 0x11a   : > { %2435 = vmatmul.mubr.msk.f32.gmra.mrb[16].mxu0 %vm295_vm1, %v2425_v40  ;;  %2441 = vmatmul.mubr.msk.f32.gmra.mrb[16].mxu1 %vm295_vm1, %v2425_v40 }
 0x11b   : > { %734 = vmatprep.mubr.f32.mxu0 %v2733_v0  ;;  %823 = vmatprep.mubr.f32.mxu1 %v2733_v0 }
 0x11e   : > { %2436 = vmatmul.mubr.msk.f32.gmra.mrb[18].mxu0 %vm295_vm1, %v2426_v41  ;;  %2442 = vmatmul.mubr.msk.f32.gmra.mrb[18].mxu1 %vm295_vm1, %v2426_v41 }
 0x11f   : > { %891 = vmatprep.mubr.bf16.mxu0 %v2734_v2  ;;  %932 = vmatprep.mubr.bf16.mxu1 %v2734_v2 }
 0x1e5   : > { %v718_v42 = vpop.f32.mrb[12].mxu0  ;;  %v807_v43 = vpop.f32.mrb[12].mxu1 }
 0x1e6   : > { %v720_v44 = vpop.f32.mrb[13].mxu0  ;;  %v809_v45 = vpop.f32.mrb[13].mxu1  ;;  %v719_v48 = vadd.f32 %v718_v42, %v623_v46  ;;  %v808_v49 = vadd.f32 %v807_v43, %v623_v46 }
 0x1e7   : > { %v721_v50 = vadd.f32 %v720_v44, %v623_v46  ;;  %v810_v51 = vadd.f32 %v809_v45, %v623_v46  ;;  %v2443_v44 = vld [vmem:[%s3233_s3 + $0x1] sm:$0x1]  ;;  %v2447_v46 = vld [vmem:[%s3231_s1 + $0x48] sm:$0xff] }
 0x1e8   : > { %v830_v60 = vmax.f32 %v719_v48, 0.0  ;;  %v832_v61 = vmax.f32 %v808_v49, 0.0  ;;  %v2446_v45 = vld [vmem:[%s3231_s1 + $0x40] sm:$0xff]  ;;  %v2449_v48 = vld [vmem:[%s3231_s1 + $0x58] sm:$0xff] }
 0x1e9   : > { %v724_v52 = vpop.f32.mrb[14].mxu0  ;;  %v813_v53 = vpop.f32.mrb[14].mxu1  ;;  %v831_v1 = vmax.f32 %v721_v50, 0.0  ;;  %v833_v3 = vmax.f32 %v810_v51, 0.0 }
 0x1ea   : > { %v725_v54 = vadd.f32 %v724_v52, %v628_v47  ;;  %v814_v55 = vadd.f32 %v813_v53, %v628_v47  ;;  %v726_v56 = vpop.f32.mrb[15].mxu0  ;;  %v815_v57 = vpop.f32.mrb[15].mxu1 }
 0x1eb   : > { %v727_v58 = vadd.f32 %v726_v56, %v628_v47  ;;  %v816_v59 = vadd.f32 %v815_v57, %v628_v47  ;;  %v2448_v47 = vld [vmem:[%s3231_s1 + $0x50] sm:$0xff]  ;;  %v958_v53 = vpop.permute.xlu0 %957 }
 0x1ec   : > { %v834_v62 = vmax.f32 %v725_v54, 0.0  ;;  %v836_v63 = vmax.f32 %v814_v55, 0.0  ;;  %v963_v54 = vpop.permute.xlu1 %962 }
 0x1ed   : > { %v835_v4 = vmax.f32 %v727_v58, 0.0  ;;  %v837_v5 = vmax.f32 %v816_v59, 0.0  ;;  %v730_v10 = vpop.f32.mrb[16].mxu0  ;;  %v819_v11 = vpop.f32.mrb[16].mxu1 }
 0x1ee   : > { %v846_v12 = vpack.c.bf16 %v834_v62, %v830_v60  ;;  %v848_v13 = vpack.c.bf16 %v836_v63, %v832_v61  ;;  %v732_v14 = vpop.f32.mrb[17].mxu0  ;;  %v821_v15 = vpop.f32.mrb[17].mxu1  ;;  %v731_v20 = vadd.f32 %v730_v10, %v633_v16  ;;  %v820_v21 = vadd.f32 %v819_v11, %v633_v16 }
 0x1ef   : > { %v847_v17 = vpack.c.bf16 %v835_v4, %v831_v1  ;;  %v849_v18 = vpack.c.bf16 %v837_v5, %v833_v3  ;;  %v733_v22 = vadd.f32 %v732_v14, %v633_v16  ;;  %v822_v23 = vadd.f32 %v821_v15, %v633_v16 }
 0x1f0   : > { %v838_v32 = vmax.f32 %v731_v20, 0.0  ;;  %v840_v33 = vmax.f32 %v820_v21, 0.0 }
 0x1f1   : > { %v736_v24 = vpop.f32.mrb[18].mxu0  ;;  %v825_v25 = vpop.f32.mrb[18].mxu1  ;;  %859 = vmatprep.subr.bf16.mxu0 %v847_v17  ;;  %900 = vmatprep.subr.bf16.mxu1 %v849_v18  ;;  %v839_v36 = vmax.f32 %v733_v22, 0.0  ;;  %v841_v37 = vmax.f32 %v822_v23, 0.0 }
 0x1f2   : > { %v737_v26 = vadd.f32 %v736_v24, %v638_v19  ;;  %v826_v27 = vadd.f32 %v825_v25, %v638_v19  ;;  %v738_v28 = vpop.f32.mrb[19].mxu0  ;;  %v827_v29 = vpop.f32.mrb[19].mxu1  ;;  %860 = vmatpush1.bf16.msra.mxu0 %v846_v12  ;;  %901 = vmatpush1.bf16.msra.mxu1 %v848_v13 }
 0x1f3   : > { %v739_v30 = vadd.f32 %v738_v28, %v638_v19  ;;  %v828_v31 = vadd.f32 %v827_v29, %v638_v19  ;;  %v968_v23 = vpop.permute.xlu0 %967 }
 0x1f4   : > { %v842_v34 = vmax.f32 %v737_v26, 0.0  ;;  %v844_v35 = vmax.f32 %v826_v27, 0.0  ;;  %v973_v26 = vpop.permute.xlu1 %972 }
 0x1f5   : > { %v843_v38 = vmax.f32 %v739_v30, 0.0  ;;  %v845_v39 = vmax.f32 %v828_v31, 0.0 }
 0x1f6   : > { %v850_v40 = vpack.c.bf16 %v842_v34, %v838_v32  ;;  %v852_v41 = vpack.c.bf16 %v844_v35, %v840_v33 }
 0x1f7   : > { %v851_v42 = vpack.c.bf16 %v843_v38, %v839_v36  ;;  %v853_v43 = vpack.c.bf16 %v845_v39, %v841_v37 }
 0x1f9   : > { %861 = vmatprep.subr.bf16.mxu0 %v851_v42  ;;  %902 = vmatprep.subr.bf16.mxu1 %v853_v43 }
 0x1fa   : > { %862 = vmatpush1.bf16.msra.mxu0 %v850_v40  ;;  %903 = vmatpush1.bf16.msra.mxu1 %v852_v41 }
 0x1fb   : > { %2454 = vmatprep.subr.msk.mxu0 %vm308_vm0, %v2853_v8  ;;  %2460 = vmatprep.subr.msk.mxu1 %vm308_vm0, %v2857_v9 }
 0x1fd   : > { %2444 = vmatmul.mubr.msk.bf16.vlgmr.msra.gmra.mrb[8].mxu0 %vm520_vm2, %v2443_v44  ;;  %2445 = vmatmul.mubr.msk.bf16.vlgmr.msra.gmra.mrb[8].mxu1 %vm520_vm2, %v2443_v44 }
 0x1fe   : > { %2455 = vmatpush1.msk.msra.mxu0 %vm308_vm0, %v2846_v6  ;;  %2461 = vmatpush1.msk.msra.mxu1 %vm308_vm0, %v2849_v7 }
 0x1ff   : > { %1051 = vmatprep.mubr.f32.mxu0 %v2733_v0  ;;  %1140 = vmatprep.mubr.f32.mxu1 %v2733_v0 }
 0x205   : > { %2456 = vmatmul.mubr.msk.f32.vlgmr.msra.gmra.mrb[20].mxu0 %vm295_vm1, %v2446_v45  ;;  %2462 = vmatmul.mubr.msk.f32.vlgmr.msra.gmra.mrb[20].mxu1 %vm295_vm1, %v2446_v45 }
 0x206   : > { %1057 = vmatprep.mubr.f32.mxu0 %v2733_v0  ;;  %1146 = vmatprep.mubr.f32.mxu1 %v2733_v0 }
 0x209   : > { %2457 = vmatmul.mubr.msk.f32.gmra.mrb[22].mxu0 %vm295_vm1, %v2447_v46  ;;  %2463 = vmatmul.mubr.msk.f32.gmra.mrb[22].mxu1 %vm295_vm1, %v2447_v46 }
 0x20a   : > { %1063 = vmatprep.mubr.f32.mxu0 %v2733_v0  ;;  %1152 = vmatprep.mubr.f32.mxu1 %v2733_v0 }
 0x20d   : > { %2458 = vmatmul.mubr.msk.f32.gmra.mrb[24].mxu0 %vm295_vm1, %v2448_v47  ;;  %2464 = vmatmul.mubr.msk.f32.gmra.mrb[24].mxu1 %vm295_vm1, %v2448_v47 }
 0x20e   : > { %1069 = vmatprep.mubr.f32.mxu0 %v2733_v0  ;;  %1158 = vmatprep.mubr.f32.mxu1 %v2733_v0 }
 0x211   : > { %2459 = vmatmul.mubr.msk.f32.gmra.mrb[26].mxu0 %vm295_vm1, %v2449_v48  ;;  %2465 = vmatmul.mubr.msk.f32.gmra.mrb[26].mxu1 %vm295_vm1, %v2449_v48 }
 0x212   : > { %1226 = vmatprep.mubr.bf16.mxu0 %v2734_v2  ;;  %1267 = vmatprep.mubr.bf16.mxu1 %v2734_v2 }
 0x2d8   : > { %v1053_v49 = vpop.f32.mrb[20].mxu0  ;;  %v1142_v50 = vpop.f32.mrb[20].mxu1 }
 0x2d9   : > { %v1055_v51 = vpop.f32.mrb[21].mxu0  ;;  %v1144_v52 = vpop.f32.mrb[21].mxu1  ;;  %v1054_v55 = vadd.f32 %v1053_v49, %v958_v53  ;;  %v1143_v56 = vadd.f32 %v1142_v50, %v958_v53 }
 0x2da   : > { %v1056_v57 = vadd.f32 %v1055_v51, %v958_v53  ;;  %v1145_v58 = vadd.f32 %v1144_v52, %v958_v53  ;;  %v2466_v51 = vld [vmem:[%s3233_s3 + $0x2] sm:$0x1]  ;;  %v2470_v53 = vld [vmem:[%s3231_s1 + $0x68] sm:$0xff] }
 0x2db   : > { %v1165_v5 = vmax.f32 %v1054_v55, 0.0  ;;  %v1167_v10 = vmax.f32 %v1143_v56, 0.0  ;;  %v2469_v52 = vld [vmem:[%s3231_s1 + $0x60] sm:$0xff]  ;;  %v2472_v55 = vld [vmem:[%s3231_s1 + $0x78] sm:$0xff] }
 0x2dc   : > { %v1059_v59 = vpop.f32.mrb[22].mxu0  ;;  %v1148_v60 = vpop.f32.mrb[22].mxu1  ;;  %v1166_v13 = vmax.f32 %v1056_v57, 0.0  ;;  %v1168_v14 = vmax.f32 %v1145_v58, 0.0 }
 0x2dd   : > { %v1060_v61 = vadd.f32 %v1059_v59, %v963_v54  ;;  %v1149_v62 = vadd.f32 %v1148_v60, %v963_v54  ;;  %v1061_v63 = vpop.f32.mrb[23].mxu0  ;;  %v1150_v1 = vpop.f32.mrb[23].mxu1 }
 0x2de   : > { %v1062_v3 = vadd.f32 %v1061_v63, %v963_v54  ;;  %v1151_v4 = vadd.f32 %v1150_v1, %v963_v54  ;;  %v2471_v54 = vld [vmem:[%s3231_s1 + $0x70] sm:$0xff]  ;;  %v1293_v60 = vpop.permute.xlu0 %1292 }
 0x2df   : > { %v1169_v11 = vmax.f32 %v1060_v61, 0.0  ;;  %v1171_v12 = vmax.f32 %v1149_v62, 0.0  ;;  %v1298_v61 = vpop.permute.xlu1 %1297 }
 0x2e0   : > { %v1170_v15 = vmax.f32 %v1062_v3, 0.0  ;;  %v1172_v16 = vmax.f32 %v1151_v4, 0.0  ;;  %v1065_v17 = vpop.f32.mrb[24].mxu0  ;;  %v1154_v18 = vpop.f32.mrb[24].mxu1 }
 0x2e1   : > { %v1181_v19 = vpack.c.bf16 %v1169_v11, %v1165_v5  ;;  %v1183_v20 = vpack.c.bf16 %v1171_v12, %v1167_v10  ;;  %v1067_v21 = vpop.f32.mrb[25].mxu0  ;;  %v1156_v22 = vpop.f32.mrb[25].mxu1  ;;  %v1066_v27 = vadd.f32 %v1065_v17, %v968_v23  ;;  %v1155_v28 = vadd.f32 %v1154_v18, %v968_v23 }
 0x2e2   : > { %v1182_v24 = vpack.c.bf16 %v1170_v15, %v1166_v13  ;;  %v1184_v25 = vpack.c.bf16 %v1172_v16, %v1168_v14  ;;  %v1068_v29 = vadd.f32 %v1067_v21, %v968_v23  ;;  %v1157_v30 = vadd.f32 %v1156_v22, %v968_v23 }
 0x2e3   : > { %v1173_v39 = vmax.f32 %v1066_v27, 0.0  ;;  %v1175_v40 = vmax.f32 %v1155_v28, 0.0 }
 0x2e4   : > { %v1071_v31 = vpop.f32.mrb[26].mxu0  ;;  %v1160_v32 = vpop.f32.mrb[26].mxu1  ;;  %1194 = vmatprep.subr.bf16.mxu0 %v1182_v24  ;;  %1235 = vmatprep.subr.bf16.mxu1 %v1184_v25  ;;  %v1174_v43 = vmax.f32 %v1068_v29, 0.0  ;;  %v1176_v44 = vmax.f32 %v1157_v30, 0.0 }
 0x2e5   : > { %v1072_v33 = vadd.f32 %v1071_v31, %v973_v26  ;;  %v1161_v34 = vadd.f32 %v1160_v32, %v973_v26  ;;  %v1073_v35 = vpop.f32.mrb[27].mxu0  ;;  %v1162_v36 = vpop.f32.mrb[27].mxu1  ;;  %1195 = vmatpush1.bf16.msra.mxu0 %v1181_v19  ;;  %1236 = vmatpush1.bf16.msra.mxu1 %v1183_v20 }
 0x2e6   : > { %v1074_v37 = vadd.f32 %v1073_v35, %v973_v26  ;;  %v1163_v38 = vadd.f32 %v1162_v36, %v973_v26  ;;  %v1303_v30 = vpop.permute.xlu0 %1302 }
 0x2e7   : > { %v1177_v41 = vmax.f32 %v1072_v33, 0.0  ;;  %v1179_v42 = vmax.f32 %v1161_v34, 0.0  ;;  %v1308_v33 = vpop.permute.xlu1 %1307 }
 0x2e8   : > { %v1178_v45 = vmax.f32 %v1074_v37, 0.0  ;;  %v1180_v46 = vmax.f32 %v1163_v38, 0.0 }
 0x2e9   : > { %v1185_v47 = vpack.c.bf16 %v1177_v41, %v1173_v39  ;;  %v1187_v48 = vpack.c.bf16 %v1179_v42, %v1175_v40 }
 0x2ea   : > { %v1186_v49 = vpack.c.bf16 %v1178_v45, %v1174_v43  ;;  %v1188_v50 = vpack.c.bf16 %v1180_v46, %v1176_v44 }
 0x2ec   : > { %1196 = vmatprep.subr.bf16.mxu0 %v1186_v49  ;;  %1237 = vmatprep.subr.bf16.mxu1 %v1188_v50 }
 0x2ed   : > { %1197 = vmatpush1.bf16.msra.mxu0 %v1185_v47  ;;  %1238 = vmatpush1.bf16.msra.mxu1 %v1187_v48 }
 0x2ee   : > { %2477 = vmatprep.subr.msk.mxu0 %vm308_vm0, %v2853_v8  ;;  %2483 = vmatprep.subr.msk.mxu1 %vm308_vm0, %v2857_v9 }
 0x2f0   : > { %2467 = vmatmul.mubr.msk.bf16.vlgmr.msra.gmra.mrb[8].mxu0 %vm520_vm2, %v2466_v51  ;;  %2468 = vmatmul.mubr.msk.bf16.vlgmr.msra.gmra.mrb[8].mxu1 %vm520_vm2, %v2466_v51 }
 0x2f1   : > { %2478 = vmatpush1.msk.msra.mxu0 %vm308_vm0, %v2846_v6  ;;  %2484 = vmatpush1.msk.msra.mxu1 %vm308_vm0, %v2849_v7 }
 0x2f2   : > { %1386 = vmatprep.mubr.f32.mxu0 %v2733_v0  ;;  %1475 = vmatprep.mubr.f32.mxu1 %v2733_v0 }
 0x2f8   : > { %2479 = vmatmul.mubr.msk.f32.vlgmr.msra.gmra.mrb[28].mxu0 %vm295_vm1, %v2469_v52  ;;  %2485 = vmatmul.mubr.msk.f32.vlgmr.msra.gmra.mrb[28].mxu1 %vm295_vm1, %v2469_v52 }
 0x2f9   : > { %1392 = vmatprep.mubr.f32.mxu0 %v2733_v0  ;;  %1481 = vmatprep.mubr.f32.mxu1 %v2733_v0 }
 0x2fc   : > { %2480 = vmatmul.mubr.msk.f32.gmra.mrb[30].mxu0 %vm295_vm1, %v2470_v53  ;;  %2486 = vmatmul.mubr.msk.f32.gmra.mrb[30].mxu1 %vm295_vm1, %v2470_v53 }
 0x2fd   : > { %1398 = vmatprep.mubr.f32.mxu0 %v2733_v0  ;;  %1487 = vmatprep.mubr.f32.mxu1 %v2733_v0 }
 0x300   : > { %2481 = vmatmul.mubr.msk.f32.gmra.mrb[32].mxu0 %vm295_vm1, %v2471_v54  ;;  %2487 = vmatmul.mubr.msk.f32.gmra.mrb[32].mxu1 %vm295_vm1, %v2471_v54 }
 0x301   : > { %1404 = vmatprep.mubr.f32.mxu0 %v2733_v0  ;;  %1493 = vmatprep.mubr.f32.mxu1 %v2733_v0 }
 0x304   : > { %2482 = vmatmul.mubr.msk.f32.gmra.mrb[34].mxu0 %vm295_vm1, %v2472_v55  ;;  %2488 = vmatmul.mubr.msk.f32.gmra.mrb[34].mxu1 %vm295_vm1, %v2472_v55 }
 0x305   : > { %1561 = vmatprep.mubr.bf16.mxu0 %v2734_v2  ;;  %1602 = vmatprep.mubr.bf16.mxu1 %v2734_v2 }
 0x3cb   : > { %v1388_v56 = vpop.f32.mrb[28].mxu0  ;;  %v1477_v57 = vpop.f32.mrb[28].mxu1 }
 0x3cc   : > { %v1390_v58 = vpop.f32.mrb[29].mxu0  ;;  %v1479_v59 = vpop.f32.mrb[29].mxu1  ;;  %v1389_v62 = vadd.f32 %v1388_v56, %v1293_v60  ;;  %v1478_v63 = vadd.f32 %v1477_v57, %v1293_v60 }
 0x3cd   : > { %v1391_v1 = vadd.f32 %v1390_v58, %v1293_v60  ;;  %v1480_v3 = vadd.f32 %v1479_v59, %v1293_v60  ;;  %v2489_v58 = vld [vmem:[%s3233_s3 + $0x3] sm:$0x1]  ;;  %v2495_v60 = vld [vmem:[%s3231_s1 + $0x98] sm:$0xff] }
 0x3ce   : > { %v1500_v16 = vmax.f32 %v1389_v62, 0.0  ;;  %v1502_v17 = vmax.f32 %v1478_v63, 0.0  ;;  %v2492_v59 = vld [vmem:[%s3231_s1 + $0x80] sm:$0xff] }
 0x3cf   : > { %v1394_v4 = vpop.f32.mrb[30].mxu0  ;;  %v1483_v5 = vpop.f32.mrb[30].mxu1  ;;  %v1501_v20 = vmax.f32 %v1391_v1, 0.0  ;;  %v1503_v21 = vmax.f32 %v1480_v3, 0.0 }
 0x3d0   : > { %v1395_v10 = vadd.f32 %v1394_v4, %v1298_v61  ;;  %v1484_v11 = vadd.f32 %v1483_v5, %v1298_v61  ;;  %v1396_v12 = vpop.f32.mrb[31].mxu0  ;;  %v1485_v13 = vpop.f32.mrb[31].mxu1 }
 0x3d1   : > { %v1397_v14 = vadd.f32 %v1396_v12, %v1298_v61  ;;  %v1486_v15 = vadd.f32 %v1485_v13, %v1298_v61  ;;  %v1628_v3 = vpop.permute.xlu0 %1627  ;;  %v1633_v4 = vpop.permute.xlu1 %1632 }
 0x3d2   : > { %v1504_v18 = vmax.f32 %v1395_v10, 0.0  ;;  %v1506_v19 = vmax.f32 %v1484_v11, 0.0 }
 0x3d3   : > { %v1505_v22 = vmax.f32 %v1397_v14, 0.0  ;;  %v1507_v23 = vmax.f32 %v1486_v15, 0.0  ;;  %v1400_v24 = vpop.f32.mrb[32].mxu0  ;;  %v1489_v25 = vpop.f32.mrb[32].mxu1 }
 0x3d4   : > { %v1516_v26 = vpack.c.bf16 %v1504_v18, %v1500_v16  ;;  %v1518_v27 = vpack.c.bf16 %v1506_v19, %v1502_v17  ;;  %v1402_v28 = vpop.f32.mrb[33].mxu0  ;;  %v1491_v29 = vpop.f32.mrb[33].mxu1  ;;  %v1401_v34 = vadd.f32 %v1400_v24, %v1303_v30  ;;  %v1490_v35 = vadd.f32 %v1489_v25, %v1303_v30 }
 0x3d5   : > { %v1517_v31 = vpack.c.bf16 %v1505_v22, %v1501_v20  ;;  %v1519_v32 = vpack.c.bf16 %v1507_v23, %v1503_v21  ;;  %v1403_v36 = vadd.f32 %v1402_v28, %v1303_v30  ;;  %v1492_v37 = vadd.f32 %v1491_v29, %v1303_v30 }
 0x3d6   : > { %v1508_v46 = vmax.f32 %v1401_v34, 0.0  ;;  %v1510_v47 = vmax.f32 %v1490_v35, 0.0  ;;  %v1638_v35 = vpop.permute.xlu0 %1637 }
 0x3d7   : > { %v1406_v38 = vpop.f32.mrb[34].mxu0  ;;  %v1495_v39 = vpop.f32.mrb[34].mxu1  ;;  %1529 = vmatprep.subr.bf16.mxu0 %v1517_v31  ;;  %1570 = vmatprep.subr.bf16.mxu1 %v1519_v32  ;;  %v1509_v50 = vmax.f32 %v1403_v36, 0.0  ;;  %v1511_v51 = vmax.f32 %v1492_v37, 0.0 }
 0x3d8   : > { %v1407_v40 = vadd.f32 %v1406_v38, %v1308_v33  ;;  %v1496_v41 = vadd.f32 %v1495_v39, %v1308_v33  ;;  %v1408_v42 = vpop.f32.mrb[35].mxu0  ;;  %v1497_v43 = vpop.f32.mrb[35].mxu1  ;;  %1530 = vmatpush1.bf16.msra.mxu0 %v1516_v26  ;;  %1571 = vmatpush1.bf16.msra.mxu1 %v1518_v27 }
 0x3d9   : > { %v1409_v44 = vadd.f32 %v1408_v42, %v1308_v33  ;;  %v1498_v45 = vadd.f32 %v1497_v43, %v1308_v33  ;;  %v1643_v38 = vpop.permute.xlu1 %1642 }
 0x3da   : > { %v1512_v48 = vmax.f32 %v1407_v40, 0.0  ;;  %v1514_v49 = vmax.f32 %v1496_v41, 0.0 }
 0x3db   : > { %v1513_v52 = vmax.f32 %v1409_v44, 0.0  ;;  %v1515_v53 = vmax.f32 %v1498_v45, 0.0 }
 0x3dc   : > { %v1520_v54 = vpack.c.bf16 %v1512_v48, %v1508_v46  ;;  %v1522_v55 = vpack.c.bf16 %v1514_v49, %v1510_v47 }
 0x3dd   : > { %v1521_v56 = vpack.c.bf16 %v1513_v52, %v1509_v50  ;;  %v1523_v57 = vpack.c.bf16 %v1515_v53, %v1511_v51 }
 0x3df   : > { %1531 = vmatprep.subr.bf16.mxu0 %v1521_v56  ;;  %1572 = vmatprep.subr.bf16.mxu1 %v1523_v57 }
 0x3e0   : > { %1532 = vmatpush1.bf16.msra.mxu0 %v1520_v54  ;;  %1573 = vmatpush1.bf16.msra.mxu1 %v1522_v55 }
 0x3e1   : > { %2500 = vmatprep.subr.msk.mxu0 %vm308_vm0, %v2853_v8  ;;  %2506 = vmatprep.subr.msk.mxu1 %vm308_vm0, %v2857_v9 }
 0x3e3   : > { %2490 = vmatmul.mubr.msk.bf16.vlgmr.msra.gmra.mrb[8].mxu0 %vm520_vm2, %v2489_v58  ;;  %2491 = vmatmul.mubr.msk.bf16.vlgmr.msra.gmra.mrb[8].mxu1 %vm520_vm2, %v2489_v58 }
 0x3e4   : > { %2501 = vmatpush1.msk.msra.mxu0 %vm308_vm0, %v2846_v6  ;;  %2507 = vmatpush1.msk.msra.mxu1 %vm308_vm0, %v2849_v7  ;;  %v2493_v6 = vld [vmem:[%s3231_s1 + $0x88] sm:$0xff]  ;;  %v2494_v7 = vld [vmem:[%s3231_s1 + $0x90] sm:$0xff] }
 0x3e5   : > { %1721 = vmatprep.mubr.f32.mxu0 %v2733_v0  ;;  %1810 = vmatprep.mubr.f32.mxu1 %v2733_v0 }
 0x3eb   : > { %2502 = vmatmul.mubr.msk.f32.vlgmr.msra.gmra.mrb[36].mxu0 %vm295_vm1, %v2492_v59  ;;  %2508 = vmatmul.mubr.msk.f32.vlgmr.msra.gmra.mrb[36].mxu1 %vm295_vm1, %v2492_v59 }
 0x3ec   : > { %1727 = vmatprep.mubr.f32.mxu0 %v2733_v0  ;;  %1816 = vmatprep.mubr.f32.mxu1 %v2733_v0 }
 0x3ef   : > { %2503 = vmatmul.mubr.msk.f32.gmra.mrb[38].mxu0 %vm295_vm1, %v2493_v6  ;;  %2509 = vmatmul.mubr.msk.f32.gmra.mrb[38].mxu1 %vm295_vm1, %v2493_v6 }
 0x3f0   : > { %1733 = vmatprep.mubr.f32.mxu0 %v2733_v0  ;;  %1822 = vmatprep.mubr.f32.mxu1 %v2733_v0 }
 0x3f3   : > { %2504 = vmatmul.mubr.msk.f32.gmra.mrb[40].mxu0 %vm295_vm1, %v2494_v7  ;;  %2510 = vmatmul.mubr.msk.f32.gmra.mrb[40].mxu1 %vm295_vm1, %v2494_v7 }
 0x3f4   : > { %1739 = vmatprep.mubr.f32.mxu0 %v2733_v0  ;;  %1828 = vmatprep.mubr.f32.mxu1 %v2733_v0 }
 0x3f7   : > { %2505 = vmatmul.mubr.msk.f32.gmra.mrb[42].mxu0 %vm295_vm1, %v2495_v60  ;;  %2511 = vmatmul.mubr.msk.f32.gmra.mrb[42].mxu1 %vm295_vm1, %v2495_v60 }
 0x3f8   : > { %1896 = vmatprep.mubr.bf16.mxu0 %v2734_v2  ;;  %1937 = vmatprep.mubr.bf16.mxu1 %v2734_v2 }
 0x4be   : > { %v1723_v61 = vpop.f32.mrb[36].mxu0  ;;  %v1812_v62 = vpop.f32.mrb[36].mxu1 }
 0x4bf   : > { %v1725_v63 = vpop.f32.mrb[37].mxu0  ;;  %v1814_v1 = vpop.f32.mrb[37].mxu1  ;;  %v1724_v5 = vadd.f32 %v1723_v61, %v1628_v3  ;;  %v1813_v10 = vadd.f32 %v1812_v62, %v1628_v3  ;;  %v2512_v61 = vld [vmem:[%s3233_s3 + $0x4] sm:$0x1] }
 0x4c0   : > { %v1726_v11 = vadd.f32 %v1725_v63, %v1628_v3  ;;  %v1815_v12 = vadd.f32 %v1814_v1, %v1628_v3  ;;  %v2651_v62 = vld [vmem:[%s2843_s25] sm:$0xff]  ;;  %v2652_v63 = vld [vmem:[%s2843_s25 + $0x8] sm:$0xff]  ;;  %v2517_v1 = vld [vmem:[%s3231_s1 + $0xb0] sm:$0xff]  ;;  %s2309_s25 = scalar_lea.sflag [#allocation3], %s240_s8 }
 0x4c1   : > { %v1835_v21 = vmax.f32 %v1724_v5, 0.0  ;;  %v1837_v22 = vmax.f32 %v1813_v10, 0.0  ;;  %v2518_v3 = vld [vmem:[%s3231_s1 + $0xb8] sm:$0xff] }
 0x4c2   : > { %v1729_v13 = vpop.f32.mrb[38].mxu0  ;;  %v1818_v14 = vpop.f32.mrb[38].mxu1  ;;  %v1836_v25 = vmax.f32 %v1726_v11, 0.0  ;;  %v1838_v26 = vmax.f32 %v1815_v12, 0.0 }
 0x4c3   : > { %v1730_v15 = vadd.f32 %v1729_v13, %v1633_v4  ;;  %v1819_v16 = vadd.f32 %v1818_v14, %v1633_v4  ;;  %v1731_v17 = vpop.f32.mrb[39].mxu0  ;;  %v1820_v18 = vpop.f32.mrb[39].mxu1 }
 0x4c4   : > { %v1732_v19 = vadd.f32 %v1731_v17, %v1633_v4  ;;  %v1821_v20 = vadd.f32 %v1820_v18, %v1633_v4  ;;  %v1963_v12 = vpop.permute.xlu0 %1962  ;;  %v1968_v13 = vpop.permute.xlu1 %1967 }
 0x4c5   : > { %v1839_v23 = vmax.f32 %v1730_v15, 0.0  ;;  %v1841_v24 = vmax.f32 %v1819_v16, 0.0 }
 0x4c6   : > { %v1840_v27 = vmax.f32 %v1732_v19, 0.0  ;;  %v1842_v28 = vmax.f32 %v1821_v20, 0.0  ;;  %v1735_v29 = vpop.f32.mrb[40].mxu0  ;;  %v1824_v30 = vpop.f32.mrb[40].mxu1 }
 0x4c7   : > { %v1851_v31 = vpack.c.bf16 %v1839_v23, %v1835_v21  ;;  %v1853_v32 = vpack.c.bf16 %v1841_v24, %v1837_v22  ;;  %v1737_v33 = vpop.f32.mrb[41].mxu0  ;;  %v1826_v34 = vpop.f32.mrb[41].mxu1  ;;  %v1736_v39 = vadd.f32 %v1735_v29, %v1638_v35  ;;  %v1825_v40 = vadd.f32 %v1824_v30, %v1638_v35 }
 0x4c8   : > { %v1852_v36 = vpack.c.bf16 %v1840_v27, %v1836_v25  ;;  %v1854_v37 = vpack.c.bf16 %v1842_v28, %v1838_v26  ;;  %v1738_v41 = vadd.f32 %v1737_v33, %v1638_v35  ;;  %v1827_v42 = vadd.f32 %v1826_v34, %v1638_v35 }
 0x4c9   : > { %v1843_v51 = vmax.f32 %v1736_v39, 0.0  ;;  %v1845_v52 = vmax.f32 %v1825_v40, 0.0 }
 0x4ca   : > { %v1741_v43 = vpop.f32.mrb[42].mxu0  ;;  %v1830_v44 = vpop.f32.mrb[42].mxu1  ;;  %1864 = vmatprep.subr.bf16.mxu0 %v1852_v36  ;;  %1905 = vmatprep.subr.bf16.mxu1 %v1854_v37  ;;  %v1844_v55 = vmax.f32 %v1738_v41, 0.0  ;;  %v1846_v56 = vmax.f32 %v1827_v42, 0.0 }
 0x4cb   : > { %v1742_v45 = vadd.f32 %v1741_v43, %v1643_v38  ;;  %v1831_v46 = vadd.f32 %v1830_v44, %v1643_v38  ;;  %v1743_v47 = vpop.f32.mrb[43].mxu0  ;;  %v1832_v48 = vpop.f32.mrb[43].mxu1  ;;  %1865 = vmatpush1.bf16.msra.mxu0 %v1851_v31  ;;  %1906 = vmatpush1.bf16.msra.mxu1 %v1853_v32 }
 0x4cc   : > { %v1744_v49 = vadd.f32 %v1743_v47, %v1643_v38  ;;  %v1833_v50 = vadd.f32 %v1832_v48, %v1643_v38  ;;  %v1973_v38 = vpop.permute.xlu0 %1972  ;;  %v1978_v41 = vpop.permute.xlu1 %1977 }
 0x4cd   : > { %v1847_v53 = vmax.f32 %v1742_v45, 0.0  ;;  %v1849_v54 = vmax.f32 %v1831_v46, 0.0 }
 0x4ce   : > { %v1848_v57 = vmax.f32 %v1744_v49, 0.0  ;;  %v1850_v58 = vmax.f32 %v1833_v50, 0.0 }
 0x4cf   : > { %v1855_v59 = vpack.c.bf16 %v1847_v53, %v1843_v51  ;;  %v1857_v6 = vpack.c.bf16 %v1849_v54, %v1845_v52 }
 0x4d0   : > { %v1856_v7 = vpack.c.bf16 %v1848_v57, %v1844_v55  ;;  %v1858_v60 = vpack.c.bf16 %v1850_v58, %v1846_v56 }
 0x4d2   : > { %1866 = vmatprep.subr.bf16.mxu0 %v1856_v7  ;;  %1907 = vmatprep.subr.bf16.mxu1 %v1858_v60 }
 0x4d3   : > { %1867 = vmatpush1.bf16.msra.mxu0 %v1855_v59  ;;  %1908 = vmatpush1.bf16.msra.mxu1 %v1857_v6 }
 0x4d4   : > { %2523 = vmatprep.subr.msk.mxu0 %vm308_vm0, %v2853_v8  ;;  %2529 = vmatprep.subr.msk.mxu1 %vm308_vm0, %v2857_v9  ;;  %v2515_v8 = vld [vmem:[%s3231_s1 + $0xa0] sm:$0xff]  ;;  %v2516_v9 = vld [vmem:[%s3231_s1 + $0xa8] sm:$0xff] }
 0x4d6   : > { %2513 = vmatmul.mubr.msk.bf16.vlgmr.msra.gmra.mrb[8].mxu0 %vm520_vm2, %v2512_v61  ;;  %2514 = vmatmul.mubr.msk.bf16.vlgmr.msra.gmra.mrb[8].mxu1 %vm520_vm2, %v2512_v61 }
 0x4d7   : > { %2524 = vmatpush1.msk.msra.mxu0 %vm308_vm0, %v2651_v62  ;;  %2530 = vmatpush1.msk.msra.mxu1 %vm308_vm0, %v2652_v63 }
 0x4d8   : > { %2056 = vmatprep.mubr.f32.mxu0 %v2733_v0  ;;  %2145 = vmatprep.mubr.f32.mxu1 %v2733_v0 }
 0x4de   : > { %2525 = vmatmul.mubr.msk.f32.vlgmr.msra.gmra.mrb[44].mxu0 %vm295_vm1, %v2515_v8  ;;  %2531 = vmatmul.mubr.msk.f32.vlgmr.msra.gmra.mrb[44].mxu1 %vm295_vm1, %v2515_v8  ;;  %v2535_v8 = vld [vmem:[%s3233_s3 + $0x5] sm:$0x1] }
 0x4df   : > { %2062 = vmatprep.mubr.f32.mxu0 %v2733_v0  ;;  %2151 = vmatprep.mubr.f32.mxu1 %v2733_v0 }
 0x4e2   : > { %2526 = vmatmul.mubr.msk.f32.gmra.mrb[46].mxu0 %vm295_vm1, %v2516_v9  ;;  %2532 = vmatmul.mubr.msk.f32.gmra.mrb[46].mxu1 %vm295_vm1, %v2516_v9  ;;  %v2735_v9 = vmov 1983009808  }
 0x4e3   : > { %2068 = vmatprep.mubr.f32.mxu0 %v2733_v0  ;;  %2157 = vmatprep.mubr.f32.mxu1 %v2733_v0 }
 0x4e6   : > { %2527 = vmatmul.mubr.msk.f32.gmra.mrb[48].mxu0 %vm295_vm1, %v2517_v1  ;;  %2533 = vmatmul.mubr.msk.f32.gmra.mrb[48].mxu1 %vm295_vm1, %v2517_v1  ;;  %v2292_v1 = vunpack.c.l.s4 %v2735_v9 }
 0x4e7   : > { %2074 = vmatprep.mubr.f32.mxu0 %v2733_v0  ;;  %2163 = vmatprep.mubr.f32.mxu1 %v2733_v0 }
 0x4ea   : > { %2528 = vmatmul.mubr.msk.f32.gmra.mrb[50].mxu0 %vm295_vm1, %v2518_v3  ;;  %2534 = vmatmul.mubr.msk.f32.gmra.mrb[50].mxu1 %vm295_vm1, %v2518_v3  ;;  %v2294_v3 = vlaneseq }
 0x4eb   : > { %2231 = vmatprep.mubr.bf16.mxu0 %v2734_v2  ;;  %2272 = vmatprep.mubr.bf16.mxu1 %v2734_v2 }
 0x5b1   : > { %v2058_v4 = vpop.f32.mrb[44].mxu0  ;;  %v2147_v5 = vpop.f32.mrb[44].mxu1 }
 0x5b2   : > { %v2060_v10 = vpop.f32.mrb[45].mxu0  ;;  %v2149_v11 = vpop.f32.mrb[45].mxu1  ;;  %v2059_v14 = vadd.f32 %v2058_v4, %v1963_v12  ;;  %v2148_v0 = vadd.f32 %v2147_v5, %v1963_v12  ;;  %v2293_v4 = vunpack.c.0.s8 %v2292_v1  ;;  %v2295_v5 = vshrl.u32 %v2294_v3, 7 }
 0x5b3   : > { %v2061_v15 = vadd.f32 %v2060_v10, %v1963_v12  ;;  %v2150_v16 = vadd.f32 %v2149_v11, %v1963_v12  ;;  %v261_v10 = vpop.permute.xlu0 %260 }
 0x5b4   : > { %v2170_v25 = vmax.f32 %v2059_v14, 0.0  ;;  %v2172_v2 = vmax.f32 %v2148_v0, 0.0 }
 0x5b5   : > { %v2064_v17 = vpop.f32.mrb[46].mxu0  ;;  %v2153_v18 = vpop.f32.mrb[46].mxu1  ;;  %v2171_v28 = vmax.f32 %v2061_v15, 0.0  ;;  %v2173_v29 = vmax.f32 %v2150_v16, 0.0 }
 0x5b6   : > { %v2065_v19 = vadd.f32 %v2064_v17, %v1968_v13  ;;  %v2154_v20 = vadd.f32 %v2153_v18, %v1968_v13  ;;  %v2066_v21 = vpop.f32.mrb[47].mxu0  ;;  %v2155_v22 = vpop.f32.mrb[47].mxu1  ;;  %v2296_v17 = vsub.s32 %v2293_v4, %v2295_v5 }
 0x5b7   : > { %v2067_v23 = vadd.f32 %v2066_v21, %v1968_v13  ;;  %v2156_v24 = vadd.f32 %v2155_v22, %v1968_v13 }
 0x5b8   : > { %v2174_v26 = vmax.f32 %v2065_v19, 0.0  ;;  %v2176_v27 = vmax.f32 %v2154_v20, 0.0 }
 0x5b9   : > { %v2175_v30 = vmax.f32 %v2067_v23, 0.0  ;;  %v2177_v31 = vmax.f32 %v2156_v24, 0.0  ;;  %v2070_v32 = vpop.f32.mrb[48].mxu0  ;;  %v2159_v33 = vpop.f32.mrb[48].mxu1 }
 0x5ba   : > { %v2186_v34 = vpack.c.bf16 %v2174_v26, %v2170_v25  ;;  %v2188_v35 = vpack.c.bf16 %v2176_v27, %v2172_v2  ;;  %v2072_v36 = vpop.f32.mrb[49].mxu0  ;;  %v2161_v37 = vpop.f32.mrb[49].mxu1  ;;  %v2071_v42 = vadd.f32 %v2070_v32, %v1973_v38  ;;  %v2160_v43 = vadd.f32 %v2159_v33, %v1973_v38 }
 0x5bb   : > { %v2187_v39 = vpack.c.bf16 %v2175_v30, %v2171_v28  ;;  %v2189_v40 = vpack.c.bf16 %v2177_v31, %v2173_v29  ;;  %v2073_v44 = vadd.f32 %v2072_v36, %v1973_v38  ;;  %v2162_v45 = vadd.f32 %v2161_v37, %v1973_v38 }
 0x5bc   : > { %v2178_v54 = vmax.f32 %v2071_v42, 0.0  ;;  %v2180_v55 = vmax.f32 %v2160_v43, 0.0 }
 0x5bd   : > { %v2076_v46 = vpop.f32.mrb[50].mxu0  ;;  %v2165_v47 = vpop.f32.mrb[50].mxu1  ;;  %2199 = vmatprep.subr.bf16.mxu0 %v2187_v39  ;;  %2240 = vmatprep.subr.bf16.mxu1 %v2189_v40  ;;  %v2179_v58 = vmax.f32 %v2073_v44, 0.0  ;;  %v2181_v59 = vmax.f32 %v2162_v45, 0.0 }
 0x5be   : > { %v2077_v48 = vadd.f32 %v2076_v46, %v1978_v41  ;;  %v2166_v49 = vadd.f32 %v2165_v47, %v1978_v41  ;;  %v2078_v50 = vpop.f32.mrb[51].mxu0  ;;  %v2167_v51 = vpop.f32.mrb[51].mxu1  ;;  %2200 = vmatpush1.bf16.msra.mxu0 %v2186_v34  ;;  %2241 = vmatpush1.bf16.msra.mxu1 %v2188_v35 }
 0x5bf   : > { %v2079_v52 = vadd.f32 %v2078_v50, %v1978_v41  ;;  %v2168_v53 = vadd.f32 %v2167_v51, %v1978_v41 }
 0x5c0   : > { %v2182_v56 = vmax.f32 %v2077_v48, 0.0  ;;  %v2184_v57 = vmax.f32 %v2166_v49, 0.0 }
 0x5c1   : > { %v2183_v6 = vmax.f32 %v2079_v52, 0.0  ;;  %v2185_v7 = vmax.f32 %v2168_v53, 0.0 }
 0x5c2   : > { %v2190_v60 = vpack.c.bf16 %v2182_v56, %v2178_v54  ;;  %v2192_v61 = vpack.c.bf16 %v2184_v57, %v2180_v55 }
 0x5c3   : > { %v2191_v62 = vpack.c.bf16 %v2183_v6, %v2179_v58  ;;  %v2193_v63 = vpack.c.bf16 %v2185_v7, %v2181_v59 }
 0x5c5   : > { %2201 = vmatprep.subr.bf16.mxu0 %v2191_v62  ;;  %2242 = vmatprep.subr.bf16.mxu1 %v2193_v63 }
 0x5c6   : > { %2202 = vmatpush1.bf16.msra.mxu0 %v2190_v60  ;;  %2243 = vmatpush1.bf16.msra.mxu1 %v2192_v61 }
 0x5c9   : > { %2536 = vmatmul.mubr.msk.bf16.vlgmr.msra.gmra.mrb[8].mxu0 %vm520_vm2, %v2535_v8  ;;  %2537 = vmatmul.mubr.msk.bf16.vlgmr.msra.gmra.mrb[8].mxu1 %vm520_vm2, %v2535_v8 }
 0x69c   : > { %v2233_v11 = vpop.f32.mrb[8].mxu0  ;;  %v2274_v12 = vpop.f32.mrb[8].mxu1 }
 0x69d   : > { %v2545_v13 = vadd.f32 %v2233_v11, %v261_v10  ;;  %v2547_v14 = vadd.f32 %v2274_v12, %v261_v10  ;;  %v2235_v0 = vpop.f32.mrb[9].mxu0  ;;  %v2276_v15 = vpop.f32.mrb[9].mxu1 }
 0x69e   : > { %v2546_v16 = vadd.f32 %v2235_v0, %v261_v10  ;;  %v2548_v18 = vadd.f32 %v2276_v15, %v261_v10  ;;  %v2237_v19 = vpop.f32.mrb[10].mxu0  ;;  %v2278_v20 = vpop.f32.mrb[10].mxu1 }
 0x69f   : > { %v2238_v21 = vpop.f32.mrb[11].mxu0  ;;  %v2279_v22 = vpop.f32.mrb[11].mxu1 }
 0x6a0   : > { %v2289_v23 = vcombine.low %v2545_v13, %v2546_v16  ;;  %v2290_v24 = vcombine.low %v2547_v14, %v2548_v18 }
 0x6a2   : > { %v2297_v25 = vrot.slane %v2289_v23, %v2296_v17  ;;  %v2304_v2 = vrot.slane %v2290_v24, %v2296_v17 }
 0x6a4   : > { %v2305_v26 = vcombine.low %v2297_v25, %v2304_v2 }
 0x6a6   : > { %2307 = vst [vmem:[%s242_s11] sm:$0xff] %v2305_v26 }
 0x6a7   : > { %2666 = shalt.err (!%p2663_p5)
}
 0x6a8   : > { %s2667_s27 = scalar_lea.hbm %s3183_s15, 128  ;;  %s2671_s8 = scalar_lea.hbm %s3235_s5, 256 }
 0x6a9   : > { %p2668_p6 = scmp.ne.s32.totalorder %s3183_s15, %s2667_s27  ;;  %p2672_p10 = scmp.lt.u32.totalorder %s3183_s15, %s3235_s5 }
 0x6aa   : > { %p2673_p11 = scmp.lt.u32.totalorder %s2671_s8, %s2667_s27  ;;  %p2675_p13 = scmp.lt.u32.totalorder %s2667_s27, %s3183_s15 }
 0x6ab   : > { %p2669_p7 = pnand %p2668_p6, %p2807_p4 }
 0x6ac   : > { %p2674_p12 = por %p2673_p11, %p2672_p10 }
 0x6ad   : > { %p2670_p9 = pneg %p2669_p7 }
 0x6ae   : > { %p2676_p0 = por %p2675_p13, %p2674_p12 }
 0x6b0   : > { %p2677_p1 = pnand %p2676_p0, %p2670_p9 }
 0x6b2   : > { %2680 = shalt.err (!%p2677_p1)
}
 0x6b3   : > { %2589 = dma.vmem_to_hbm [thread:$0]  (%p2807_p4), %s3185_s12, 128, %s3183_s15, %s2309_s25  }
 0x6b4 PF: > { %p2595_p2 = scmp.ge.s32.totalorder %s2731_s23, 2  ;;  %s2337_s11 = sand.u32 1, %s2711_s18  }
 0x6b5   : > { %s2338_s13 = scalar_lea.sflag [#allocation3], %s2337_s11 }
 0x6b6   : > { %p2592_p3 = pnand %p2595_p2, %p2814_p8 }
 0x6b8   : > { %2706 = dma.done.wait (!%p2592_p3), %s2338_s13, 128  }
 0x6b9   : > { %2708 = vsyncadd (!%p2592_p3), %s2338_s13, 4294967168  ;;  %s18_s23 = sadd.s32 1, %s2731_s23   ;;  %s3238_s18 = smov %s2715_s19 }
 0x6ba   : > { %p15_p5 = scmp.ge.s32.totalorder %s18_s23, 4   ;;  %s3239_s19 = smov %s2719_s20 }
 0x6bb   : > { %s3240_s20 = smov %s2820_s6  ;;  %s3241_s21 = smov %s2727_s22 }
 0x6bc   : > { %s3242_s22 = smov %s3244_s26  ;;  %17 = sbr.rel (!%p15_p5) target bundleno = 4 (0x4), region = 90 }
 0x6c3   :  { %2343 = vsyncpa [#allocation3], 1 }
 0x6c4   :  { %2345 = vsyncpa [#allocation3 + $0x1], 1 }

</bundles_post_ra>
